<compile_context>
chip_gen: v5e
topology: v5e:2x2
jax: 0.10.0
libtpu: 0.0.40
codegen_flags: <defaults>
</compile_context>

<pallas_src>
import functools
import math

import jax
import jax.numpy as jnp
from jax.experimental import pallas as pl
from jax.experimental.pallas import tpu as pltpu


def _spatial_attn_kernel(x_ref, w_ref, b_ref, o_ref, *, scale):
    # x_ref : (Rt, T, C)   rows = flattened (batch, spatial) pairs
    # w_ref : (4, C, C)    [Wq^T, Wk^T, Wv^T, Wo^T]  (so x @ w == x @ W^T)
    # b_ref : (4, C)       [bq, bk, bv, bo]
    # o_ref : (Rt, T, C)
    rt, t, c = x_ref.shape

    x = x_ref[...]                       # (Rt, T, C)
    xf = x.reshape(rt * t, c)            # (Rt*T, C) -> one big MXU matmul per projection
    b = b_ref[...]                       # (4, C)

    q = (jnp.dot(xf, w_ref[0], preferred_element_type=jnp.float32)
         + b[0:1, :]).reshape(rt, t, c)
    k = (jnp.dot(xf, w_ref[1], preferred_element_type=jnp.float32)
         + b[1:2, :]).reshape(rt, t, c)
    v = (jnp.dot(xf, w_ref[2], preferred_element_type=jnp.float32)
         + b[2:3, :]).reshape(rt, t, c)

    # Attention over the T axis, batched over rows (MXU batched matmul).
    s = jnp.einsum('rtc,rsc->rts', q, k,
                   preferred_element_type=jnp.float32) * scale      # (Rt, T, T)

    # Numerically stable softmax along the last (lane) axis.
    m = jnp.max(s, axis=-1, keepdims=True)
    e = jnp.exp(s - m)
    p = e / jnp.sum(e, axis=-1, keepdims=True)

    a = jnp.einsum('rts,rsc->rtc', p, v,
                   preferred_element_type=jnp.float32)               # (Rt, T, C)

    out = (jnp.dot(a.reshape(rt * t, c), w_ref[3],
                   preferred_element_type=jnp.float32) + b[3:4, :])
    o_ref[...] = out.reshape(rt, t, c).astype(o_ref.dtype)


def _pick_row_tile(r, max_tile=256):
    """Largest divisor of r that is <= max_tile (keeps VMEM bounded, big tiles)."""
    for cand in range(min(r, max_tile), 0, -1):
        if r % cand == 0:
            return cand
    return r


def spatial_attention_forward(x, wq, bq, wk, bk, wv, bv, wo, bo, n_heads):
    """x: (B, d_model, S, T); w*: (d_model, d_model); b*: (d_model,)."""
    B, C, S, T = x.shape
    R = B * S
    scale = 1.0 / math.sqrt(C // n_heads)

    # (B, C, S, T) -> (B, S, T, C) -> (R, T, C): feature dim last (lane axis).
    xr = jnp.transpose(x, (0, 2, 3, 1)).reshape(R, T, C).astype(jnp.float32)

    # Pre-transpose weights once (x @ W^T == x @ wT); stack so the kernel sees
    # a single resident VMEM operand for all four projections.
    w_stack = jnp.stack([wq.T, wk.T, wv.T, wo.T]).astype(jnp.float32)   # (4, C, C)
    b_stack = jnp.stack([bq, bk, bv, bo]).astype(jnp.float32)           # (4, C)

    r_tile = _pick_row_tile(R)

    out = pl.pallas_call(
        functools.partial(_spatial_attn_kernel, scale=scale),
        out_shape=jax.ShapeDtypeStruct((R, T, C), jnp.float32),
        grid_spec=pltpu.PrefetchScalarGridSpec(
            num_scalar_prefetch=0,
            grid=(R // r_tile,),
            in_specs=[
                pl.BlockSpec((r_tile, T, C), lambda i: (i, 0, 0)),   # streamed x rows
                pl.BlockSpec((4, C, C), lambda i: (0, 0, 0)),        # weights (resident)
                pl.BlockSpec((4, C), lambda i: (0, 0)),              # biases  (resident)
            ],
            out_specs=pl.BlockSpec((r_tile, T, C), lambda i: (i, 0, 0)),
        ),
        compiler_params=pltpu.CompilerParams(
            dimension_semantics=("parallel",)),
    )(xr, w_stack, b_stack)

    # (R, T, C) -> (B, S, T, C) -> (B, C, S, T)
    return jnp.transpose(out.reshape(B, S, T, C), (0, 3, 1, 2))


def _reference(x, wq, bq, wk, bk, wv, bv, wo, bo, n_heads):
    """Pure-JAX mirror of the PyTorch forward."""
    B, C, S, T = x.shape
    xr = jnp.transpose(x, (0, 3, 2, 1))              # (B, T, S, C)
    q = xr @ wq.T + bq
    k = xr @ wk.T + bk
    v = xr @ wv.T + bv
    q = jnp.swapaxes(q, 1, 2)                        # (B, S, T, C)
    k = jnp.swapaxes(k, 1, 2)
    v = jnp.swapaxes(v, 1, 2)
    scale = 1.0 / math.sqrt(C // n_heads)
    s = jnp.einsum('bstc,bsuc->bstu', q, k) * scale
    p = jax.nn.softmax(s, axis=-1)
    a = jnp.einsum('bstu,bsuc->bstc', p, v)
    a = jnp.swapaxes(a, 1, 2)                        # (B, T, S, C)
    out = a @ wo.T + bo                              # (B, T, S, C)
    return jnp.transpose(out, (0, 3, 2, 1))          # (B, C, S, T)


if __name__ == "__main__":
    B, d_model, n_heads, S, T = 2, 32, 4, 8, 16

    key = jax.random.PRNGKey(0)
    kx, kq, kk, kv, ko, kbq, kbk, kbv, kbo = jax.random.split(key, 9)

    x = jax.random.normal(kx, (B, d_model, S, T), dtype=jnp.float32)

    bound = 1.0 / math.sqrt(d_model)   # PyTorch nn.Linear default init range
    wq = jax.random.uniform(kq, (d_model, d_model), minval=-bound, maxval=bound)
    wk = jax.random.uniform(kk, (d_model, d_model), minval=-bound, maxval=bound)
    wv = jax.random.uniform(kv, (d_model, d_model), minval=-bound, maxval=bound)
    wo = jax.random.uniform(ko, (d_model, d_model), minval=-bound, maxval=bound)
    bq = jax.random.uniform(kbq, (d_model,), minval=-bound, maxval=bound)
    bk = jax.random.uniform(kbk, (d_model,), minval=-bound, maxval=bound)
    bv = jax.random.uniform(kbv, (d_model,), minval=-bound, maxval=bound)
    bo = jax.random.uniform(kbo, (d_model,), minval=-bound, maxval=bound)

    out = spatial_attention_forward(x, wq, bq, wk, bk, wv, bv, wo, bo, n_heads)
    jax.block_until_ready(out)

    ref = _reference(x, wq, bq, wk, bk, wv, bv, wo, bo, n_heads)
    assert out.shape == (B, d_model, S, T), out.shape
    assert jnp.allclose(out, ref, atol=1e-4, rtol=1e-4), \
        f"max err {jnp.max(jnp.abs(out - ref))}"

    print("KERNEL_OK")
</pallas_src>

<mosaic_0001>
module attributes {stable_mosaic.version = 11 : i64} {
  func.func @_spatial_attn_kernel(%arg0: i32, %arg1: memref<16x16x32xf32, #tpu.memory_space<vmem>>, %arg2: memref<4x32x32xf32, #tpu.memory_space<vmem>>, %arg3: memref<4x32xf32, #tpu.memory_space<vmem>>, %arg4: memref<16x16x32xf32, #tpu.memory_space<vmem>>) attributes {dimension_semantics = [#tpu.dimension_semantics<parallel>], iteration_bounds = array<i64: 1>, scalar_prefetch = 0 : i64, scratch_operands = 0 : i64, tpu.core_type = #tpu.core_type<tc>, window_params = [{transform_indices = @transform_0, window_bounds = array<i64: 16, 16, 32>}, {pipeline_mode = #tpu.pipeline_mode<synchronous>, transform_indices = @transform_1, window_bounds = array<i64: 4, 32, 32>}, {pipeline_mode = #tpu.pipeline_mode<synchronous>, transform_indices = @transform_2, window_bounds = array<i64: 4, 32>}, {transform_indices = @transform_3, window_bounds = array<i64: 16, 16, 32>}]} {
    %c0 = arith.constant 0 : index
    %c0_0 = arith.constant 0 : index
    %c0_1 = arith.constant 0 : index
    %0 = vector.load %arg1[%c0, %c0_0, %c0_1] : memref<16x16x32xf32, #tpu.memory_space<vmem>>, vector<16x16x32xf32>
    %1 = vector.shape_cast %0 : vector<16x16x32xf32> to vector<256x32xf32>
    %c0_2 = arith.constant 0 : index
    %c0_3 = arith.constant 0 : index
    %2 = vector.load %arg3[%c0_2, %c0_3] : memref<4x32xf32, #tpu.memory_space<vmem>>, vector<4x32xf32>
    %c0_4 = arith.constant 0 : index
    %c0_5 = arith.constant 0 : index
    %c0_6 = arith.constant 0 : index
    %3 = vector.load %arg2[%c0_4, %c0_5, %c0_6] : memref<4x32x32xf32, #tpu.memory_space<vmem>>, vector<1x32x32xf32>
    %4 = vector.shape_cast %3 : vector<1x32x32xf32> to vector<32x32xf32>
    %cst = arith.constant dense<0.000000e+00> : vector<256x32xf32>
    %5 = tpu.matmul %1, %4, %cst {dimension_numbers = #tpu.dot_dimension_numbers<[1], [0], [0], [1], [0, 0, 1, 1], [], []>} : vector<256x32xf32>, vector<32x32xf32>, vector<256x32xf32> -> vector<256x32xf32>
    %6 = vector.extract_strided_slice %2 {offsets = [0, 0], sizes = [1, 32], strides = [1, 1]} : vector<4x32xf32> to vector<1x32xf32>
    %7 = vector.broadcast %6 : vector<1x32xf32> to vector<256x32xf32>
    %8 = arith.addf %5, %7 : vector<256x32xf32>
    %9 = vector.shape_cast %8 : vector<256x32xf32> to vector<16x16x32xf32>
    %c1 = arith.constant 1 : index
    %c0_7 = arith.constant 0 : index
    %c0_8 = arith.constant 0 : index
    %10 = vector.load %arg2[%c1, %c0_7, %c0_8] : memref<4x32x32xf32, #tpu.memory_space<vmem>>, vector<1x32x32xf32>
    %11 = vector.shape_cast %10 : vector<1x32x32xf32> to vector<32x32xf32>
    %cst_9 = arith.constant dense<0.000000e+00> : vector<256x32xf32>
    %12 = tpu.matmul %1, %11, %cst_9 {dimension_numbers = #tpu.dot_dimension_numbers<[1], [0], [0], [1], [0, 0, 1, 1], [], []>} : vector<256x32xf32>, vector<32x32xf32>, vector<256x32xf32> -> vector<256x32xf32>
    %13 = vector.extract_strided_slice %2 {offsets = [1, 0], sizes = [1, 32], strides = [1, 1]} : vector<4x32xf32> to vector<1x32xf32>
    %14 = vector.broadcast %13 : vector<1x32xf32> to vector<256x32xf32>
    %15 = arith.addf %12, %14 : vector<256x32xf32>
    %16 = vector.shape_cast %15 : vector<256x32xf32> to vector<16x16x32xf32>
    %c2 = arith.constant 2 : index
    %c0_10 = arith.constant 0 : index
    %c0_11 = arith.constant 0 : index
    %17 = vector.load %arg2[%c2, %c0_10, %c0_11] : memref<4x32x32xf32, #tpu.memory_space<vmem>>, vector<1x32x32xf32>
    %18 = vector.shape_cast %17 : vector<1x32x32xf32> to vector<32x32xf32>
    %cst_12 = arith.constant dense<0.000000e+00> : vector<256x32xf32>
    %19 = tpu.matmul %1, %18, %cst_12 {dimension_numbers = #tpu.dot_dimension_numbers<[1], [0], [0], [1], [0, 0, 1, 1], [], []>} : vector<256x32xf32>, vector<32x32xf32>, vector<256x32xf32> -> vector<256x32xf32>
    %20 = vector.extract_strided_slice %2 {offsets = [2, 0], sizes = [1, 32], strides = [1, 1]} : vector<4x32xf32> to vector<1x32xf32>
    %21 = vector.broadcast %20 : vector<1x32xf32> to vector<256x32xf32>
    %22 = arith.addf %19, %21 : vector<256x32xf32>
    %23 = vector.shape_cast %22 : vector<256x32xf32> to vector<16x16x32xf32>
    "tpu.trace_start"() <{level = 10 : i32, message = "rtc,rsc->rts"}> : () -> ()
    %cst_13 = arith.constant dense<0.000000e+00> : vector<16x16x16xf32>
    %24 = tpu.matmul %9, %16, %cst_13 {dimension_numbers = #tpu.dot_dimension_numbers<[2], [2], [1], [1], [0, 0, 0, 1, 1, 1], [0], [0]>} : vector<16x16x32xf32>, vector<16x16x32xf32>, vector<16x16x16xf32> -> vector<16x16x16xf32>
    "tpu.trace_stop"() : () -> ()
    %cst_14 = arith.constant 0.353553385 : f32
    %25 = vector.broadcast %cst_14 : f32 to vector<16x16x16xf32>
    %26 = arith.mulf %24, %25 : vector<16x16x16xf32>
    %cst_15 = arith.constant dense<0xFF800000> : vector<16x16xf32>
    %27 = vector.multi_reduction <maximumf>, %26, %cst_15 [2] : vector<16x16x16xf32> to vector<16x16xf32>
    %28 = vector.shape_cast %27 : vector<16x16xf32> to vector<16x16x1xf32>
    %29 = vector.broadcast %28 : vector<16x16x1xf32> to vector<16x16x16xf32>
    %30 = arith.subf %26, %29 : vector<16x16x16xf32>
    %31 = math.exp %30 : vector<16x16x16xf32>
    %cst_16 = arith.constant dense<0.000000e+00> : vector<16x16xf32>
    %32 = vector.multi_reduction <add>, %31, %cst_16 [2] : vector<16x16x16xf32> to vector<16x16xf32>
    %33 = vector.shape_cast %32 : vector<16x16xf32> to vector<16x16x1xf32>
    %34 = vector.broadcast %33 : vector<16x16x1xf32> to vector<16x16x16xf32>
    %35 = arith.divf %31, %34 : vector<16x16x16xf32>
    "tpu.trace_start"() <{level = 10 : i32, message = "rts,rsc->rtc"}> : () -> ()
    %cst_17 = arith.constant dense<0.000000e+00> : vector<16x16x32xf32>
    %36 = tpu.matmul %35, %23, %cst_17 {dimension_numbers = #tpu.dot_dimension_numbers<[2], [1], [1], [2], [0, 0, 0, 1, 1, 2], [0], [0]>} : vector<16x16x16xf32>, vector<16x16x32xf32>, vector<16x16x32xf32> -> vector<16x16x32xf32>
    "tpu.trace_stop"() : () -> ()
    %37 = vector.shape_cast %36 : vector<16x16x32xf32> to vector<256x32xf32>
    %c3 = arith.constant 3 : index
    %c0_18 = arith.constant 0 : index
    %c0_19 = arith.constant 0 : index
    %38 = vector.load %arg2[%c3, %c0_18, %c0_19] : memref<4x32x32xf32, #tpu.memory_space<vmem>>, vector<1x32x32xf32>
    %39 = vector.shape_cast %38 : vector<1x32x32xf32> to vector<32x32xf32>
    %cst_20 = arith.constant dense<0.000000e+00> : vector<256x32xf32>
    %40 = tpu.matmul %37, %39, %cst_20 {dimension_numbers = #tpu.dot_dimension_numbers<[1], [0], [0], [1], [0, 0, 1, 1], [], []>} : vector<256x32xf32>, vector<32x32xf32>, vector<256x32xf32> -> vector<256x32xf32>
    %41 = vector.extract_strided_slice %2 {offsets = [3, 0], sizes = [1, 32], strides = [1, 1]} : vector<4x32xf32> to vector<1x32xf32>
    %42 = vector.broadcast %41 : vector<1x32xf32> to vector<256x32xf32>
    %43 = arith.addf %40, %42 : vector<256x32xf32>
    %44 = vector.shape_cast %43 : vector<256x32xf32> to vector<16x16x32xf32>
    %c0_21 = arith.constant 0 : index
    %c0_22 = arith.constant 0 : index
    %c0_23 = arith.constant 0 : index
    %45 = vector.load %arg4[%c0_21, %c0_22, %c0_23] : memref<16x16x32xf32, #tpu.memory_space<vmem>>, vector<16x16x32xf32>
    tpu.vector_store %arg4[%c0_21, %c0_22, %c0_23], %44 {strides = array<i32>} : memref<16x16x32xf32, #tpu.memory_space<vmem>>, vector<16x16x32xf32>,
    return
  }
  func.func @transform_0(%arg0: i32) -> (i32, i32, i32) {
    %c0_i32 = arith.constant 0 : i32
    %c0_i32_0 = arith.constant 0 : i32
    %c0_i32_1 = arith.constant 0 : i32
    return %arg0, %c0_i32, %c0_i32_0 : i32, i32, i32
  }
  func.func @transform_1(%arg0: i32) -> (i32, i32, i32) {
    %c0_i32 = arith.constant 0 : i32
    %c0_i32_0 = arith.constant 0 : i32
    %c0_i32_1 = arith.constant 0 : i32
    %c0_i32_2 = arith.constant 0 : i32
    return %c0_i32, %c0_i32_0, %c0_i32_1 : i32, i32, i32
  }
  func.func @transform_2(%arg0: i32) -> (i32, i32) {
    %c0_i32 = arith.constant 0 : i32
    %c0_i32_0 = arith.constant 0 : i32
    %c0_i32_1 = arith.constant 0 : i32
    return %c0_i32, %c0_i32_0 : i32, i32
  }
  func.func @transform_3(%arg0: i32) -> (i32, i32, i32) {
    %c0_i32 = arith.constant 0 : i32
    %c0_i32_0 = arith.constant 0 : i32
    %c0_i32_1 = arith.constant 0 : i32
    return %arg0, %c0_i32, %c0_i32_0 : i32, i32, i32
  }
}

</mosaic_0001>

<bundles_post_ra>
// kernel: tpu_custom_call.1
= control target key start
LH: loop header
LB: loop body
LE: loop exit
PB: predicated region body
PF: predicated region fallthrough
CT: control target
= control target key end

     0   :  { %8 = vsyncpa [#allocation3], 0  ;;  %s4314_s0 = inlined_call_operand.hbm [shape: f32[16,16,32], index: 0, kind: input, shape index: {}]   ;;  %s4315_s1 = inlined_call_operand.hbm [shape: f32[4,32,32], index: 1, kind: input, shape index: {}]   ;;  %s4316_s2 = inlined_call_operand.hbm [shape: f32[4,32], index: 2, kind: input, shape index: {}]   ;;  %s4317_s3 = inlined_call_operand.hbm [shape: f32[16,16,32], index: 3, kind: output, shape index: {}]  }
   0x1   :  { %9 = vsyncpa [#allocation6], 0 }
   0x2   :  { %10 = vsyncpa [#allocation4], 0  ;;  %s28_s14 = sshll.u32 %s4315_s1, 4  ;;  %s3111_s15 = smov [#allocation5]   ;;  %s29_s14 = int_to_ptr.hbm [resolvable:$true] %s28_s14 }
   0x3   :  { %s30_s16 = sshll.u32 %s3111_s15, 4  ;;  %s15_s19 = sshll.u32 %s4314_s0, 4  ;;  %s31_s16 = int_to_ptr.vmem [resolvable:$true] %s30_s16  ;;  %s16_s19 = int_to_ptr.hbm [resolvable:$true] %s15_s19 }
   0x4   :  { %s3112_s20 = smov 128   ;;  %s3113_s21 = smov 8  }
   0x5   :  { %36 = dma.hbm_to_vmem [thread:$0]  %s29_s14, 2048, %s31_s16, [#allocation6], %s3112_s20, %s3112_s20, %s3113_s21  }
   0x6   :  { %s3114_s22 = smov [#allocation2]   ;;  %s42_s1 = sshll.u32 %s4316_s2, 4  ;;  %s43_s1 = int_to_ptr.hbm [resolvable:$true] %s42_s1 }
   0x7   :  { %s17_s23 = sshll.u32 %s3114_s22, 4  ;;  %s3115_s0 = smov [#allocation7]   ;;  %s18_s23 = int_to_ptr.vmem [resolvable:$true] %s17_s23 }
   0x8   :  { %23 = dma.hbm_to_vmem [thread:$0]  %s16_s19, 4096, %s18_s23, [#allocation3], %s3112_s20, %s3112_s20, %s3113_s21  }
   0x9   :  { %s44_s26 = sshll.u32 %s3115_s0, 4  ;;  %s45_s26 = int_to_ptr.vmem [resolvable:$true] %s44_s26 }
   0xa   :  { %47 = dma.hbm_to_vmem [thread:$0]  %s43_s1, 64, %s45_s26, [#allocation6]  }
   0xb   :  { %3105 = dma.done.wait [#allocation3], 4096  }
   0xc   :  { %3106 = vsyncadd [#allocation3], 4294963200 }
   0xd   :  { %3107 = dma.done.wait [#allocation6], 2112  }
   0xe   :  { %3108 = vsyncadd [#allocation6], 4294965184  ;;  %v96_v0 = vld [vmem:[#allocation5 + $0x18] sm:$0xff]  ;;  %v95_v1 = vld [vmem:[#allocation5 + $0x10] sm:$0xff]  ;;  %vm98_vm0 = vcmask 261120   ;;  %vm1138_vm1 = vcmask 130048  }
   0xf   :  { %2862 = vmatpush.msra.mxu1 %v96_v0  ;;  %207 = vmatpush.msra.mxu0 %v96_v0  ;;  %v94_v2 = vld [vmem:[#allocation5 + $0x8] sm:$0xff]  ;;  %v93_v3 = vld [vmem:[#allocation5] sm:$0xff]  ;;  %v3160_v6 = vld [vmem:[#allocation2 + $0x50] sm:$0xff]  ;;  %s3116_s2 = smov [#allocation8]   ;;  %s2624_s30 = sshll.u32 %s4317_s3, 4  ;;  %s2625_s30 = int_to_ptr.hbm [resolvable:$true] %s2624_s30 }
  0x10   :  { %2864 = vmatpush.msra.mxu3 %v96_v0  ;;  %2863 = vmatpush.msra.mxu2 %v96_v0  ;;  %v3152_v4 = vld [vmem:[#allocation2 + $0x40] sm:$0xff]  ;;  %v3156_v5 = vld [vmem:[#allocation2 + $0x48] sm:$0xff]  ;;  %v3164_v7 = vld [vmem:[#allocation2 + $0x58] sm:$0xff]  ;;  %s2622_s27 = sshll.u32 %s3116_s2, 4  ;;  %s2623_s27 = int_to_ptr.vmem [resolvable:$true] %s2622_s27 }
  0x11   :  { %2865 = vmatpush.msra.mxu1 %v95_v1  ;;  %208 = vmatpush.msra.mxu0 %v95_v1  ;;  %v312_v8 = vld [vmem:[#allocation5 + $0x38] sm:$0xff]  ;;  %v311_v9 = vld [vmem:[#allocation5 + $0x30] sm:$0xff]  ;;  %v3168_v10 = vld [vmem:[#allocation2] sm:$0xff] }
  0x12   :  { %2867 = vmatpush.msra.mxu3 %v95_v1  ;;  %2866 = vmatpush.msra.mxu2 %v95_v1  ;;  %v310_v11 = vld [vmem:[#allocation5 + $0x28] sm:$0xff]  ;;  %v309_v12 = vld [vmem:[#allocation5 + $0x20] sm:$0xff]  ;;  %v3184_v16 = vld [vmem:[#allocation2 + $0x10] sm:$0xff] }
  0x13   :  { %2868 = vmatpush.msra.mxu1 %v94_v2  ;;  %209 = vmatpush.msra.mxu0 %v94_v2  ;;  %v3172_v13 = vld [vmem:[#allocation2 + $0x60] sm:$0xff]  ;;  %v3176_v14 = vld [vmem:[#allocation2 + $0x8] sm:$0xff]  ;;  %v3188_v17 = vld [vmem:[#allocation2 + $0x70] sm:$0xff] }
  0x14   :  { %2870 = vmatpush.msra.mxu3 %v94_v2  ;;  %2869 = vmatpush.msra.mxu2 %v94_v2  ;;  %v3180_v15 = vld [vmem:[#allocation2 + $0x68] sm:$0xff]  ;;  %v3192_v18 = vld [vmem:[#allocation2 + $0x18] sm:$0xff]  ;;  %v3200_v20 = vld [vmem:[#allocation2 + $0x20] sm:$0xff] }
  0x15   :  { %2871 = vmatpush.msra.mxu1 %v93_v3  ;;  %210 = vmatpush.msra.mxu0 %v93_v3  ;;  %v3196_v19 = vld [vmem:[#allocation2 + $0x78] sm:$0xff]  ;;  %v3206_v21 = vld [vmem:[#allocation2 + $0x28] sm:$0xff]  ;;  %v3212_v22 = vld [vmem:[#allocation2 + $0x30] sm:$0xff] }
  0x16   :  { %2646 = vmatmul.msk.f32.vlgmr.msra.gmra.mxu1 %vm98_vm0, %v3152_v4  ;;  %2873 = vmatpush.msra.mxu3 %v93_v3  ;;  %v3218_v23 = vld [vmem:[#allocation2 + $0x38] sm:$0xff]  ;;  %v3228_v24 = vld [vmem:[#allocation2 + $0xc0] sm:$0xff]  ;;  %v3234_v25 = vld [vmem:[#allocation2 + $0xc8] sm:$0xff] }
  0x17   :  { %2872 = vmatpush.msra.mxu2 %v93_v3  ;;  %326 = vmatpush.msrb.mxu1 %v312_v8  ;;  %v3242_v27 = vld [vmem:[#allocation2 + $0xd0] sm:$0xff]  ;;  %v3250_v29 = vld [vmem:[#allocation2 + $0xd8] sm:$0xff]  ;;  %v3258_v31 = vld [vmem:[#allocation2 + $0xe0] sm:$0xff] }
  0x18   :  { %2638 = vmatmul.msk.f32.vlgmr.msra.gmra.mxu0 %vm98_vm0, %v3168_v10  ;;  %2662 = vmatmul.msk.f32.vlgmr.msra.gmra.mxu3 %vm98_vm0, %v3228_v24  ;;  %v3266_v33 = vld [vmem:[#allocation2 + $0xe8] sm:$0xff]  ;;  %v3274_v35 = vld [vmem:[#allocation2 + $0xf0] sm:$0xff]  ;;  %v3276_v36 = vld [vmem:[#allocation2 + $0x80] sm:$0xff] }
  0x19   :  { %327 = vmatpush.msrb.mxu1 %v311_v9  ;;  %2654 = vmatmul.msk.f32.vlgmr.msra.gmra.mxu2 %vm98_vm0, %v3276_v36  ;;  %v3286_v38 = vld [vmem:[#allocation2 + $0xf8] sm:$0xff]  ;;  %v3288_v39 = vld [vmem:[#allocation2 + $0x88] sm:$0xff]  ;;  %v3298_v41 = vld [vmem:[#allocation2 + $0x90] sm:$0xff] }
  0x1a   :  { %v3306_v43 = vld [vmem:[#allocation2 + $0x98] sm:$0xff]  ;;  %v3312_v46 = vld [vmem:[#allocation2 + $0xa0] sm:$0xff]  ;;  %v3327_v52 = vld [vmem:[#allocation2 + $0xa8] sm:$0xff] }
  0x1b   :  { %328 = vmatpush.msrb.mxu1 %v310_v11  ;;  %v3318_v47 = vld [vmem:[#allocation7] sm:$0xf]  ;;  %v3340_v58 = vld [vmem:[#allocation2 + $0xb0] sm:$0xff]  ;;  %v3350_v63 = vld [vmem:[#allocation2 + $0xb8] sm:$0xff] }
  0x1c   :  { %v3321_v48 = vperm.slane %v3318_v47, 1  ;;  %v3330_v53 = vperm.slane %v3318_v47, 0 }
  0x1d   :  { %329 = vmatpush.msrb.mxu1 %v309_v12 }
  0x1e   :  { %2647 = vmatmul.msk.f32.gmra.mxu1 %vm98_vm0, %v3156_v5 }
  0x20   :  { %2639 = vmatmul.msk.f32.gmra.mxu0 %vm98_vm0, %v3176_v14  ;;  %2663 = vmatmul.msk.f32.gmra.mxu3 %vm98_vm0, %v3234_v25 }
  0x21   :  { %2655 = vmatmul.msk.f32.gmra.mxu2 %vm98_vm0, %v3288_v39 }
  0x26   :  { %2648 = vmatmul.msk.f32.gmra.mxu1 %vm98_vm0, %v3160_v6 }
  0x28   :  { %2640 = vmatmul.msk.f32.gmra.mxu0 %vm98_vm0, %v3184_v16  ;;  %2664 = vmatmul.msk.f32.gmra.mxu3 %vm98_vm0, %v3242_v27 }
  0x29   :  { %2656 = vmatmul.msk.f32.gmra.mxu2 %vm98_vm0, %v3298_v41 }
  0x2e   :  { %2649 = vmatmul.msk.f32.gmra.mxu1 %vm98_vm0, %v3164_v7 }
  0x30   :  { %2641 = vmatmul.msk.f32.gmra.mxu0 %vm98_vm0, %v3192_v18  ;;  %2665 = vmatmul.msk.f32.gmra.mxu3 %vm98_vm0, %v3250_v29 }
  0x31   :  { %2657 = vmatmul.msk.f32.gmra.mxu2 %vm98_vm0, %v3306_v43 }
  0x36   :  { %2650 = vmatmul.msk.f32.gmra.mxu1 %vm98_vm0, %v3172_v13 }
  0x38   :  { %2642 = vmatmul.msk.f32.gmra.mxu0 %vm98_vm0, %v3200_v20  ;;  %2666 = vmatmul.msk.f32.gmra.mxu3 %vm98_vm0, %v3258_v31 }
  0x39   :  { %2658 = vmatmul.msk.f32.gmra.mxu2 %vm98_vm0, %v3312_v46 }
  0x3e   :  { %2651 = vmatmul.msk.f32.gmra.mxu1 %vm98_vm0, %v3180_v15 }
  0x40   :  { %2643 = vmatmul.msk.f32.gmra.mxu0 %vm98_vm0, %v3206_v21  ;;  %2667 = vmatmul.msk.f32.gmra.mxu3 %vm98_vm0, %v3266_v33 }
  0x41   :  { %2659 = vmatmul.msk.f32.gmra.mxu2 %vm98_vm0, %v3327_v52 }
  0x46   :  { %2652 = vmatmul.msk.f32.gmra.mxu1 %vm98_vm0, %v3188_v17 }
  0x48   :  { %2644 = vmatmul.msk.f32.gmra.mxu0 %vm98_vm0, %v3212_v22  ;;  %2668 = vmatmul.msk.f32.gmra.mxu3 %vm98_vm0, %v3274_v35 }
  0x49   :  { %2660 = vmatmul.msk.f32.gmra.mxu2 %vm98_vm0, %v3340_v58 }
  0x4e   :  { %2653 = vmatmul.msk.f32.gmra.mxu1 %vm98_vm0, %v3196_v19 }
  0x50   :  { %2645 = vmatmul.msk.f32.gmra.mxu0 %vm98_vm0, %v3218_v23  ;;  %2669 = vmatmul.msk.f32.gmra.mxu3 %vm98_vm0, %v3286_v38 }
  0x51   :  { %2661 = vmatmul.msk.f32.gmra.mxu2 %vm98_vm0, %v3350_v63 }
  0x56   :  { %2670 = vmatmul.msk.f32.vlgmr.msrb.gmra.mxu1 %vm98_vm0, %v3168_v10 }
  0x5e   :  { %2671 = vmatmul.msk.f32.gmra.mxu1 %vm98_vm0, %v3176_v14 }
  0x66   :  { %2672 = vmatmul.msk.f32.gmra.mxu1 %vm98_vm0, %v3184_v16 }
  0x6e   :  { %2673 = vmatmul.msk.f32.gmra.mxu1 %vm98_vm0, %v3192_v18 }
  0x76   :  { %2674 = vmatmul.msk.f32.gmra.mxu1 %vm98_vm0, %v3200_v20 }
  0x7e   :  { %2675 = vmatmul.msk.f32.gmra.mxu1 %vm98_vm0, %v3206_v21 }
  0x86   :  { %2676 = vmatmul.msk.f32.gmra.mxu1 %vm98_vm0, %v3212_v22 }
  0x8e   :  { %2677 = vmatmul.msk.f32.gmra.mxu1 %vm98_vm0, %v3218_v23 }
  0x93   :  { %v3240_v26 = vpop.f32.mrf.mxu1 }
  0x95   :  { %v212_v44 = vpop.f32.mrf.mxu0 }
  0x96   :  { %2678 = vmatmul.msk.f32.gmra.mxu1 %vm98_vm0, %v3152_v4  ;;  %v213_v55 = vadd.f32 %v212_v44, %v3330_v53 }
  0x9b   :  { %v3248_v28 = vpop.f32.mrf.mxu1 }
  0x9d   :  { %v215_v49 = vpop.f32.mrf.mxu0 }
  0x9e   :  { %2679 = vmatmul.msk.f32.gmra.mxu1 %vm98_vm0, %v3156_v5  ;;  %v216_v59 = vadd.f32 %v215_v49, %v3330_v53 }
  0xa3   :  { %v3256_v30 = vpop.f32.mrf.mxu1 }
  0xa5   :  { %v218_v57 = vpop.f32.mrf.mxu0 }
  0xa6   :  { %2680 = vmatmul.msk.f32.gmra.mxu1 %vm98_vm0, %v3160_v6  ;;  %v219_v1 = vadd.f32 %v218_v57, %v3330_v53 }
  0xab   :  { %v3264_v32 = vpop.f32.mrf.mxu1 }
  0xad   :  { %v221_v62 = vpop.f32.mrf.mxu0 }
  0xae   :  { %2681 = vmatmul.msk.f32.gmra.mxu1 %vm98_vm0, %v3164_v7  ;;  %v222_v8 = vadd.f32 %v221_v62, %v3330_v53 }
  0xb3   :  { %v3272_v34 = vpop.f32.mrf.mxu1 }
  0xb5   :  { %v224_v3 = vpop.f32.mrf.mxu0 }
  0xb6   :  { %2682 = vmatmul.msk.f32.gmra.mxu1 %vm98_vm0, %v3172_v13  ;;  %v225_v44 = vadd.f32 %v224_v3, %v3330_v53 }
  0xbb   :  { %v3284_v37 = vpop.f32.mrf.mxu1 }
  0xbe   :  { %2683 = vmatmul.msk.f32.gmra.mxu1 %vm98_vm0, %v3180_v15 }
  0xc3   :  { %v3296_v40 = vpop.f32.mrf.mxu1 }
  0xc6   :  { %2684 = vmatmul.msk.f32.gmra.mxu1 %vm98_vm0, %v3188_v17 }
  0xcb   :  { %v3304_v42 = vpop.f32.mrf.mxu1 }
  0xce   :  { %2685 = vmatmul.msk.f32.gmra.mxu1 %vm98_vm0, %v3196_v19 }
  0xd3   :  { %v331_v45 = vpop.f32.mrf.mxu1 }
  0xd4   :  { %v332_v54 = vadd.f32 %v331_v45, %v3321_v48  ;;  %v227_v45 = vpop.f32.mrf.mxu0 }
  0xd6   :  { %2686 = vmatmul.msk.f32.gmra.mxu1 %vm98_vm0, %v3276_v36 }
  0xdb   :  { %v334_v50 = vpop.f32.mrf.mxu1 }
  0xdc   :  { %v335_v51 = vadd.f32 %v334_v50, %v3321_v48  ;;  %v228_v50 = vadd.f32 %v227_v45, %v3330_v53 }
  0xde   :  { %2687 = vmatmul.msk.f32.gmra.mxu1 %vm98_vm0, %v3288_v39  ;;  %2734 = vmatpush.xpose.msk.msrb.mxu3 %vm98_vm0, %v335_v51 }
  0xe2   :  { %2735 = vmatpush.xpose.msk.msrb.mxu3 %vm98_vm0, %v332_v54 }
  0xe3   :  { %v337_v56 = vpop.f32.mrf.mxu1 }
  0xe4   :  { %v338_v0 = vadd.f32 %v337_v56, %v3321_v48 }
  0xe5   :  { %2736 = vmatmul.msk.f32.vlgmr.msrb.gmra.mxu3 %vm98_vm0, %v213_v55  ;;  %v230_v55 = vpop.f32.mrf.mxu0 }
  0xe6   :  { %2688 = vmatmul.msk.f32.gmra.mxu1 %vm98_vm0, %v3298_v41  ;;  %v231_v57 = vadd.f32 %v230_v55, %v3330_v53 }
  0xeb   :  { %v340_v60 = vpop.f32.mrf.mxu1 }
  0xec   :  { %v341_v61 = vadd.f32 %v340_v60, %v3321_v48 }
  0xed   :  { %2737 = vmatmul.msk.f32.gmra.mxu3 %vm98_vm0, %v216_v59  ;;  %v233_v60 = vpop.f32.mrf.mxu0 }
  0xee   :  { %2689 = vmatmul.msk.f32.gmra.mxu1 %vm98_vm0, %v3306_v43  ;;  %2738 = vmatpush.xpose.msk.msra.mxu3 %vm98_vm0, %v341_v61  ;;  %v3384_v61 = vpop.f32.mrf.mxu3  ;;  %v234_v62 = vadd.f32 %v233_v60, %v3330_v53  ;;  %v252_v60 = vadd.f32 %v3284_v37, %v3330_v53 }
  0xf2   :  { %2739 = vmatpush.xpose.msk.msra.mxu3 %vm98_vm0, %v338_v0 }
  0xf3   :  { %v343_v2 = vpop.f32.mrf.mxu1 }
  0xf4   :  { %v344_v12 = vadd.f32 %v343_v2, %v3321_v48 }
  0xf5   :  { %2740 = vmatmul.msk.f32.vlgmr.msra.gmra.mxu3 %vm98_vm0, %v219_v1 }
  0xf6   :  { %2690 = vmatmul.msk.f32.gmra.mxu1 %vm98_vm0, %v3312_v46  ;;  %v3394_v3 = vpop.f32.mrf.mxu3 }
  0xfb   :  { %v346_v9 = vpop.f32.mrf.mxu1 }
  0xfc   :  { %v347_v11 = vadd.f32 %v346_v9, %v3321_v48 }
  0xfd   :  { %2741 = vmatmul.msk.f32.gmra.mxu3 %vm98_vm0, %v222_v8  ;;  %v237_v8 = vadd.f32 %v3240_v26, %v3330_v53  ;;  %v243_v26 = vadd.f32 %v3256_v30, %v3330_v53 }
  0xfe   :  { %2691 = vmatmul.msk.f32.gmra.mxu1 %vm98_vm0, %v3327_v52  ;;  %2742 = vmatpush.xpose.msk.msrb.mxu3 %vm98_vm0, %v347_v11  ;;  %v240_v11 = vadd.f32 %v3248_v28, %v3330_v53  ;;  %v3404_v45 = vpop.f32.mrf.mxu3 }
 0x102   :  { %2743 = vmatpush.xpose.msk.msrb.mxu3 %vm98_vm0, %v344_v12 }
 0x103   :  { %v349_v49 = vpop.f32.mrf.mxu1 }
 0x104   :  { %v350_v56 = vadd.f32 %v349_v49, %v3321_v48 }
 0x105   :  { %2744 = vmatmul.msk.f32.vlgmr.msrb.gmra.mxu3 %vm98_vm0, %v225_v44 }
 0x106   :  { %2692 = vmatmul.msk.f32.gmra.mxu1 %vm98_vm0, %v3340_v58 }
 0x10b   :  { %v352_v51 = vpop.f32.mrf.mxu1 }
 0x10c   :  { %v353_v54 = vadd.f32 %v352_v51, %v3321_v48  ;;  %v246_v51 = vadd.f32 %v3264_v32, %v3330_v53 }
 0x10d   :  { %2745 = vmatmul.msk.f32.gmra.mxu3 %vm98_vm0, %v228_v50  ;;  %v3417_v50 = vpop.f32.mrf.mxu3 }
 0x10e   :  { %2693 = vmatmul.msk.f32.gmra.mxu1 %vm98_vm0, %v3350_v63  ;;  %2746 = vmatpush.xpose.msk.msra.mxu3 %vm98_vm0, %v353_v54 }
 0x112   :  { %2747 = vmatpush.xpose.msk.msra.mxu3 %vm98_vm0, %v350_v56 }
 0x113   :  { %v355_v59 = vpop.f32.mrf.mxu1 }
 0x114   :  { %v356_v2 = vadd.f32 %v355_v59, %v3321_v48 }
 0x115   :  { %2748 = vmatmul.msk.f32.vlgmr.msra.gmra.mxu3 %vm98_vm0, %v231_v57  ;;  %v3427_v30 = vpop.f32.mrf.mxu3  ;;  %v249_v57 = vadd.f32 %v3272_v34, %v3330_v53  ;;  %v260_v34 = vpop.f32.mrf.mxu2 }
 0x116   :  { %2694 = vmatmul.msk.f32.gmra.mxu1 %vm98_vm0, %v3228_v24 }
 0x11b   :  { %v358_v0 = vpop.f32.mrf.mxu1 }
 0x11c   :  { %v359_v1 = vadd.f32 %v358_v0, %v3321_v48 }
 0x11d   :  { %2749 = vmatmul.msk.f32.gmra.mxu3 %vm98_vm0, %v234_v62  ;;  %v3435_v59 = vpop.f32.mrf.mxu3 }
 0x11e   :  { %2695 = vmatmul.msk.f32.gmra.mxu1 %vm98_vm0, %v3234_v25  ;;  %2750 = vmatpush.xpose.msk.msrb.mxu3 %vm98_vm0, %v359_v1 }
 0x122   :  { %2751 = vmatpush.xpose.msk.msrb.mxu3 %vm98_vm0, %v356_v2  ;;  %v255_v2 = vadd.f32 %v3296_v40, %v3330_v53  ;;  %v261_v40 = vadd.f32 %v260_v34, %v3330_v53  ;;  %v429_v34 = vld [vmem:[#allocation5 + $0x48] sm:$0xff] }
 0x123   :  { %v361_v9 = vpop.f32.mrf.mxu1 }
 0x124   :  { %v362_v49 = vadd.f32 %v361_v9, %v3321_v48  ;;  %v263_v9 = vpop.f32.mrf.mxu2 }
 0x125   :  { %2752 = vmatmul.msk.f32.vlgmr.msrb.gmra.mxu3 %vm98_vm0, %v237_v8  ;;  %v3448_v37 = vpop.f32.mrf.mxu3 }
 0x126   :  { %2696 = vmatmul.msk.f32.gmra.mxu1 %vm98_vm0, %v3242_v27 }
 0x12b   :  { %v364_v12 = vpop.f32.mrf.mxu1 }
 0x12c   :  { %v365_v44 = vadd.f32 %v364_v12, %v3321_v48 }
 0x12d   :  { %2753 = vmatmul.msk.f32.gmra.mxu3 %vm98_vm0, %v240_v11  ;;  %v258_v11 = vadd.f32 %v3304_v42, %v3330_v53 }
 0x12e   :  { %2697 = vmatmul.msk.f32.gmra.mxu1 %vm98_vm0, %v3250_v29  ;;  %2754 = vmatpush.xpose.msk.msra.mxu3 %vm98_vm0, %v365_v44 }
 0x132   :  { %2755 = vmatpush.xpose.msk.msra.mxu3 %vm98_vm0, %v362_v49 }
 0x133   :  { %v367_v28 = vpop.f32.mrf.mxu1 }
 0x134   :  { %v368_v56 = vadd.f32 %v367_v28, %v3321_v48 }
 0x135   :  { %2756 = vmatmul.msk.f32.vlgmr.msra.gmra.mxu3 %vm98_vm0, %v243_v26  ;;  %v3457_v26 = vpop.f32.mrf.mxu3 }
 0x136   :  { %2698 = vmatmul.msk.f32.gmra.mxu1 %vm98_vm0, %v3258_v31 }
 0x13b   :  { %v370_v54 = vpop.f32.mrf.mxu1 }
 0x13c   :  { %v371_v55 = vadd.f32 %v370_v54, %v3321_v48  ;;  %v264_v54 = vadd.f32 %v263_v9, %v3330_v53 }
 0x13d   :  { %2757 = vmatmul.msk.f32.gmra.mxu3 %vm98_vm0, %v246_v51  ;;  %v266_v51 = vpop.f32.mrf.mxu2 }
 0x13e   :  { %2699 = vmatmul.msk.f32.gmra.mxu1 %vm98_vm0, %v3266_v33  ;;  %2758 = vmatpush.xpose.msk.msrb.mxu3 %vm98_vm0, %v371_v55  ;;  %v267_v9 = vadd.f32 %v266_v51, %v3330_v53 }
 0x142   :  { %2759 = vmatpush.xpose.msk.msrb.mxu3 %vm98_vm0, %v368_v56 }
 0x143   :  { %v373_v32 = vpop.f32.mrf.mxu1 }
 0x144   :  { %v374_v1 = vadd.f32 %v373_v32, %v3321_v48  ;;  %v431_v32 = vld [vmem:[#allocation5 + $0x58] sm:$0xff] }
 0x145   :  { %2760 = vmatmul.msk.f32.vlgmr.msrb.gmra.mxu3 %vm98_vm0, %v249_v57  ;;  %445 = vmatpush.msrb.mxu2 %v431_v32 }
 0x146   :  { %2700 = vmatmul.msk.f32.gmra.mxu1 %vm98_vm0, %v3274_v35 }
 0x14b   :  { %v376_v62 = vpop.f32.mrf.mxu1 }
 0x14c   :  { %v377_v0 = vadd.f32 %v376_v62, %v3321_v48  ;;  %v430_v62 = vld [vmem:[#allocation5 + $0x50] sm:$0xff] }
 0x14d   :  { %2761 = vmatmul.msk.f32.gmra.mxu3 %vm98_vm0, %v252_v60  ;;  %446 = vmatpush.msrb.mxu2 %v430_v62 }
 0x14e   :  { %2701 = vmatmul.msk.f32.gmra.mxu1 %vm98_vm0, %v3286_v38  ;;  %2762 = vmatpush.xpose.msk.msra.mxu3 %vm98_vm0, %v377_v0 }
 0x14f   :  { %447 = vmatpush.msrb.mxu2 %v429_v34 }
 0x152   :  { %2763 = vmatpush.xpose.msk.msra.mxu3 %vm98_vm0, %v374_v1  ;;  %v269_v1 = vpop.f32.mrf.mxu2 }
 0x153   :  { %v379_v8 = vpop.f32.mrf.mxu1 }
 0x154   :  { %v380_v49 = vadd.f32 %v379_v8, %v3321_v48 }
 0x155   :  { %2764 = vmatmul.msk.f32.vlgmr.msra.gmra.mxu3 %vm98_vm0, %v255_v2 }
 0x15b   :  { %v382_v12 = vpop.f32.mrf.mxu1 }
 0x15c   :  { %v383_v44 = vadd.f32 %v382_v12, %v3321_v48 }
 0x15d   :  { %2765 = vmatmul.msk.f32.gmra.mxu3 %vm98_vm0, %v258_v11  ;;  %v428_v11 = vld [vmem:[#allocation5 + $0x40] sm:$0xff] }
 0x15e   :  { %2766 = vmatpush.xpose.msk.msrb.mxu3 %vm98_vm0, %v383_v44  ;;  %448 = vmatpush.msrb.mxu2 %v428_v11 }
 0x15f   :  { %2702 = vmatmul.msk.f32.vlgmr.msrb.gmra.mxu2 %vm98_vm0, %v3168_v10 }
 0x162   :  { %2767 = vmatpush.xpose.msk.msrb.mxu3 %vm98_vm0, %v380_v49 }
 0x163   :  { %v385_v28 = vpop.f32.mrf.mxu1 }
 0x164   :  { %v386_v0 = vadd.f32 %v385_v28, %v3321_v48  ;;  %v270_v28 = vadd.f32 %v269_v1, %v3330_v53 }
 0x165   :  { %2768 = vmatmul.msk.f32.vlgmr.msrb.gmra.mxu3 %vm98_vm0, %v261_v40  ;;  %v272_v40 = vpop.f32.mrf.mxu2 }
 0x167   :  { %2703 = vmatmul.msk.f32.gmra.mxu2 %vm98_vm0, %v3176_v14 }
 0x168   :  { %v575_v42 = vpop.f32.mrf.mxu3 }
 0x169   :  { %v3463_v55 = vmul.f32 0.35355338, %v575_v42 }
 0x16b   :  { %v388_v56 = vpop.f32.mrf.mxu1  ;;  %v1139_v57 = vsel %vm1138_vm1, %v3463_v55, -inf }
 0x16c   :  { %v389_v60 = vadd.f32 %v388_v56, %v3321_v48  ;;  %1140 = vmax.xlane.f32.xlu0 %v1139_v57 }
 0x16d   :  { %2769 = vmatmul.msk.f32.gmra.mxu3 %vm98_vm0, %v264_v54  ;;  %v275_v62 = vpop.f32.mrf.mxu2 }
 0x16e   :  { %2770 = vmatpush.xpose.msk.msra.mxu3 %vm98_vm0, %v389_v60  ;;  %v273_v60 = vadd.f32 %v272_v40, %v3330_v53  ;;  %v276_v34 = vadd.f32 %v275_v62, %v3330_v53 }
 0x16f   :  { %2704 = vmatmul.msk.f32.gmra.mxu2 %vm98_vm0, %v3184_v16 }
 0x170   :  { %v578_v2 = vpop.f32.mrf.mxu3 }
 0x171   :  { %v3471_v8 = vmul.f32 0.35355338, %v578_v2 }
 0x172   :  { %2771 = vmatpush.xpose.msk.msra.mxu3 %vm98_vm0, %v386_v0 }
 0x173   :  { %v391_v12 = vpop.f32.mrf.mxu1  ;;  %v1142_v44 = vsel %vm1138_vm1, %v3471_v8, -inf }
 0x174   :  { %1143 = vmax.xlane.f32.xlu0 %v1142_v44  ;;  %v392_v10 = vadd.f32 %v391_v12, %v3321_v48 }
 0x175   :  { %2772 = vmatmul.msk.f32.vlgmr.msra.gmra.mxu3 %vm98_vm0, %v267_v9  ;;  %v278_v44 = vpop.f32.mrf.mxu2 }
 0x177   :  { %2705 = vmatmul.msk.f32.gmra.mxu2 %vm98_vm0, %v3192_v18 }
 0x178   :  { %v610_v49 = vpop.f32.mrf.mxu3 }
 0x179   :  { %v3481_v42 = vmul.f32 0.35355338, %v610_v49 }
 0x17b   :  { %v394_v51 = vpop.f32.mrf.mxu1  ;;  %v1145_v54 = vsel %vm1138_vm1, %v3481_v42, -inf }
 0x17c   :  { %v395_v56 = vadd.f32 %v394_v51, %v3321_v48  ;;  %1146 = vmax.xlane.f32.xlu1 %v1145_v54 }
 0x17d   :  { %2773 = vmatmul.msk.f32.gmra.mxu3 %vm98_vm0, %v270_v28  ;;  %v279_v28 = vadd.f32 %v278_v44, %v3330_v53  ;;  %v281_v54 = vpop.f32.mrf.mxu2  ;;  %v288_v44 = vadd.f32 %v3394_v3, %v3330_v53  ;;  %v291_v3 = vadd.f32 %v3404_v45, %v3330_v53 }
 0x17e   :  { %2774 = vmatpush.xpose.msk.msrb.mxu3 %vm98_vm0, %v395_v56 }
 0x17f   :  { %2706 = vmatmul.msk.f32.gmra.mxu2 %vm98_vm0, %v3200_v20 }
 0x180   :  { %v613_v57 = vpop.f32.mrf.mxu3 }
 0x181   :  { %v3491_v32 = vmul.f32 0.35355338, %v613_v57  ;;  %v282_v57 = vadd.f32 %v281_v54, %v3330_v53 }
 0x182   :  { %2775 = vmatpush.xpose.msk.msrb.mxu3 %vm98_vm0, %v392_v10 }
 0x183   :  { %v397_v0 = vpop.f32.mrf.mxu1  ;;  %v1148_v14 = vsel %vm1138_vm1, %v3491_v32, -inf }
 0x184   :  { %1149 = vmax.xlane.f32.xlu1 %v1148_v14  ;;  %v398_v16 = vadd.f32 %v397_v0, %v3321_v48 }
 0x185   :  { %2776 = vmatmul.msk.f32.vlgmr.msrb.gmra.mxu3 %vm98_vm0, %v273_v60 }
 0x187   :  { %2707 = vmatmul.msk.f32.gmra.mxu2 %vm98_vm0, %v3206_v21 }
 0x188   :  { %v645_v1 = vpop.f32.mrf.mxu3 }
 0x189   :  { %v3501_v2 = vmul.f32 0.35355338, %v645_v1 }
 0x18b   :  { %v400_v9 = vpop.f32.mrf.mxu1  ;;  %v1151_v11 = vsel %vm1138_vm1, %v3501_v2, -inf }
 0x18c   :  { %v401_v12 = vadd.f32 %v400_v9, %v3321_v48  ;;  %1152 = vmax.xlane.f32.xlu2 %v1151_v11 }
 0x18d   :  { %2777 = vmatmul.msk.f32.gmra.mxu3 %vm98_vm0, %v276_v34  ;;  %v285_v34 = vadd.f32 %v3384_v61, %v3330_v53 }
 0x18e   :  { %2778 = vmatpush.xpose.msk.msra.mxu3 %vm98_vm0, %v401_v12 }
 0x18f   :  { %2708 = vmatmul.msk.f32.gmra.mxu2 %vm98_vm0, %v3212_v22 }
 0x190   :  { %v648_v49 = vpop.f32.mrf.mxu3 }
 0x191   :  { %v3511_v40 = vmul.f32 0.35355338, %v648_v49 }
 0x192   :  { %2779 = vmatpush.xpose.msk.msra.mxu3 %vm98_vm0, %v398_v16 }
 0x193   :  { %v403_v51 = vpop.f32.mrf.mxu1  ;;  %v1154_v18 = vsel %vm1138_vm1, %v3511_v40, -inf }
 0x194   :  { %1155 = vmax.xlane.f32.xlu2 %v1154_v18  ;;  %v404_v20 = vadd.f32 %v403_v51, %v3321_v48  ;;  %v294_v18 = vadd.f32 %v3417_v50, %v3330_v53 }
 0x195   :  { %2780 = vmatmul.msk.f32.vlgmr.msra.gmra.mxu3 %vm98_vm0, %v279_v28 }
 0x197   :  { %2709 = vmatmul.msk.f32.gmra.mxu2 %vm98_vm0, %v3218_v23 }
 0x198   :  { %v680_v56 = vpop.f32.mrf.mxu3 }
 0x199   :  { %v3520_v10 = vmul.f32 0.35355338, %v680_v56 }
 0x19b   :  { %v406_v60 = vpop.f32.mrf.mxu1  ;;  %v1157_v62 = vsel %vm1138_vm1, %v3520_v10, -inf }
 0x19c   :  { %v407_v0 = vadd.f32 %v406_v60, %v3321_v48  ;;  %1158 = vmax.xlane.f32.xlu0 %v1157_v62  ;;  %v300_v60 = vadd.f32 %v3435_v59, %v3330_v53  ;;  %v306_v59 = vadd.f32 %v3457_v26, %v3330_v53 }
 0x19d   :  { %2781 = vmatmul.msk.f32.gmra.mxu3 %vm98_vm0, %v282_v57  ;;  %v297_v57 = vadd.f32 %v3427_v30, %v3330_v53 }
 0x19e   :  { %2782 = vmatpush.xpose.msk.msrb.mxu3 %vm98_vm0, %v407_v0 }
 0x19f   :  { %2710 = vmatmul.msk.f32.gmra.mxu2 %vm98_vm0, %v3152_v4 }
 0x1a0   :  { %v683_v14 = vpop.f32.mrf.mxu3 }
 0x1a1   :  { %v3531_v1 = vmul.f32 0.35355338, %v683_v14 }
 0x1a2   :  { %2783 = vmatpush.xpose.msk.msrb.mxu3 %vm98_vm0, %v404_v20  ;;  %v303_v20 = vadd.f32 %v3448_v37, %v3330_v53 }
 0x1a3   :  { %v409_v9 = vpop.f32.mrf.mxu1  ;;  %v1160_v21 = vsel %vm1138_vm1, %v3531_v1, -inf }
 0x1a4   :  { %1161 = vmax.xlane.f32.xlu1 %v1160_v21  ;;  %v410_v22 = vadd.f32 %v409_v9, %v3321_v48 }
 0x1a5   :  { %2784 = vmatmul.msk.f32.vlgmr.msrb.gmra.mxu3 %vm98_vm0, %v285_v34 }
 0x1a7   :  { %2711 = vmatmul.msk.f32.gmra.mxu2 %vm98_vm0, %v3156_v5 }
 0x1a8   :  { %v715_v11 = vpop.f32.mrf.mxu3 }
 0x1a9   :  { %v3541_v12 = vmul.f32 0.35355338, %v715_v11 }
 0x1ab   :  { %v412_v16 = vpop.f32.mrf.mxu1  ;;  %v1163_v61 = vsel %vm1138_vm1, %v3541_v12, -inf }
 0x1ac   :  { %v413_v49 = vadd.f32 %v412_v16, %v3321_v48  ;;  %1164 = vmax.xlane.f32.xlu1 %v1163_v61 }
 0x1ad   :  { %2785 = vmatmul.msk.f32.gmra.mxu3 %vm98_vm0, %v288_v44 }
 0x1ae   :  { %2786 = vmatpush.xpose.msk.msra.mxu3 %vm98_vm0, %v413_v49 }
 0x1af   :  { %2712 = vmatmul.msk.f32.gmra.mxu2 %vm98_vm0, %v3160_v6 }
 0x1b0   :  { %v718_v28 = vpop.f32.mrf.mxu3 }
 0x1b2   :  { %2787 = vmatpush.xpose.msk.msra.mxu3 %vm98_vm0, %v410_v22 }
 0x1b3   :  { %v415_v51 = vpop.f32.mrf.mxu1 }
 0x1b4   :  { %v416_v45 = vadd.f32 %v415_v51, %v3321_v48 }
 0x1b5   :  { %2788 = vmatmul.msk.f32.vlgmr.msra.gmra.mxu3 %vm98_vm0, %v291_v3 }
 0x1b7   :  { %2713 = vmatmul.msk.f32.gmra.mxu2 %vm98_vm0, %v3164_v7 }
 0x1b8   :  { %v3559_v23 = vpop.f32.mrf.mxu3 }
 0x1bb   :  { %v418_v54 = vpop.f32.mrf.mxu1 }
 0x1bc   :  { %v419_v56 = vadd.f32 %v418_v54, %v3321_v48 }
 0x1bd   :  { %2789 = vmatmul.msk.f32.gmra.mxu3 %vm98_vm0, %v294_v18 }
 0x1be   :  { %2790 = vmatpush.xpose.msk.msrb.mxu3 %vm98_vm0, %v419_v56 }
 0x1bf   :  { %2714 = vmatmul.msk.f32.gmra.mxu2 %vm98_vm0, %v3172_v13 }
 0x1c0   :  { %v3569_v4 = vpop.f32.mrf.mxu3 }
 0x1c2   :  { %2791 = vmatpush.xpose.msk.msrb.mxu3 %vm98_vm0, %v416_v45 }
 0x1c3   :  { %v421_v50 = vpop.f32.mrf.mxu1 }
 0x1c4   :  { %v422_v30 = vadd.f32 %v421_v50, %v3321_v48 }
 0x1c5   :  { %2792 = vmatmul.msk.f32.vlgmr.msrb.gmra.mxu3 %vm98_vm0, %v297_v57 }
 0x1c7   :  { %2715 = vmatmul.msk.f32.gmra.mxu2 %vm98_vm0, %v3180_v15 }
 0x1c8   :  { %v3577_v5 = vpop.f32.mrf.mxu3 }
 0x1cb   :  { %v424_v62 = vpop.f32.mrf.mxu1 }
 0x1cc   :  { %v425_v0 = vadd.f32 %v424_v62, %v3321_v48 }
 0x1cd   :  { %2793 = vmatmul.msk.f32.gmra.mxu3 %vm98_vm0, %v300_v60 }
 0x1ce   :  { %2794 = vmatpush.xpose.msk.msra.mxu3 %vm98_vm0, %v425_v0 }
 0x1cf   :  { %2716 = vmatmul.msk.f32.gmra.mxu2 %vm98_vm0, %v3188_v17 }
 0x1d0   :  { %v3587_v6 = vpop.f32.mrf.mxu3 }
 0x1d2   :  { %2795 = vmatpush.xpose.msk.msra.mxu3 %vm98_vm0, %v422_v30 }
 0x1d5   :  { %2796 = vmatmul.msk.f32.vlgmr.msra.gmra.mxu3 %vm98_vm0, %v303_v20 }
 0x1d7   :  { %2717 = vmatmul.msk.f32.gmra.mxu2 %vm98_vm0, %v3196_v19  ;;  %v3627_v19 = vmul.f32 0.35355338, %v718_v28 }
 0x1d8   :  { %v3595_v7 = vpop.f32.mrf.mxu3 }
 0x1dd   :  { %2797 = vmatmul.msk.f32.gmra.mxu3 %vm98_vm0, %v306_v59 }
 0x1df   :  { %v1141_v48 = vpop.xlane.xlu0 %1140  ;;  %2718 = vmatmul.msk.f32.gmra.mxu2 %vm98_vm0, %v3276_v36  ;;  %v1166_v36 = vsel %vm1138_vm1, %v3627_v19, -inf }
 0x1e0   :  { %v1235_v14 = vsub.f32 %v3463_v55, %v1141_v48  ;;  %v3603_v34 = vpop.f32.mrf.mxu3 }
 0x1e2   :  { %v1267_v37 = vmul.f32 1.442695, %v1235_v14  ;;  %v3625_v61 = vpop.f32.mrf.mxu2  ;;  %v3674_v14 = vmul.f32 0.35355338, %v3569_v4 }
 0x1e4   :  { %2880 = vpow2.f32 %v1267_v37 }
 0x1e7   :  { %v1144_v13 = vpop.xlane.xlu0 %1143  ;;  %2719 = vmatmul.msk.f32.gmra.mxu2 %vm98_vm0, %v3288_v39 }
 0x1e8   :  { %v1236_v9 = vsub.f32 %v3471_v8, %v1144_v13  ;;  %v3608_v21 = vpop.f32.mrf.mxu3 }
 0x1ea   :  { %v3610_v53 = vpop.eup %2880  ;;  %v1269_v15 = vmul.f32 1.442695, %v1236_v9  ;;  %v3640_v28 = vpop.f32.mrf.mxu2 }
 0x1eb   :  { %v1331_v26 = vsel %vm1138_vm1, %v3610_v53, 0.0 }
 0x1ec   :  { %2882 = vpow2.f32 %v1269_v15  ;;  %1332 = vadd.xlane.f32.xlu2 %v1331_v26  ;;  %v3679_v15 = vmul.f32 0.35355338, %v3587_v6  ;;  %v3695_v6 = vmul.f32 0.35355338, %v3608_v21 }
 0x1ef   :  { %v1147_v55 = vpop.xlane.xlu1 %1146  ;;  %2720 = vmatmul.msk.f32.gmra.mxu2 %vm98_vm0, %v3298_v41 }
 0x1f0   :  { %v1237_v17 = vsub.f32 %v3481_v42, %v1147_v55  ;;  %v3617_v11 = vpop.f32.mrf.mxu3 }
 0x1f2   :  { %v3619_v44 = vpop.eup %2882  ;;  %v1271_v8 = vmul.f32 1.442695, %v1237_v17  ;;  %v1172_v17 = vsel %vm1138_vm1, %v3674_v14, -inf }
 0x1f3   :  { %v1334_v16 = vsel %vm1138_vm1, %v3619_v44, 0.0 }
 0x1f4   :  { %2884 = vpow2.f32 %v1271_v8  ;;  %1335 = vadd.xlane.f32.xlu0 %v1334_v16 }
 0x1f7   :  { %v1150_v49 = vpop.xlane.xlu1 %1149  ;;  %2721 = vmatmul.msk.f32.gmra.mxu2 %vm98_vm0, %v3306_v43 }
 0x1f8   :  { %v1238_v42 = vsub.f32 %v3491_v32, %v1150_v49  ;;  %v3630_v22 = vpop.f32.mrf.mxu3  ;;  %v3643_v32 = vmul.f32 0.35355338, %v3559_v23  ;;  %v456_v23 = vpop.f32.mrf.mxu2  ;;  %v3698_v49 = vmul.f32 0.35355338, %v3595_v7 }
 0x1fa   :  { %v3632_v3 = vpop.eup %2884  ;;  %v1273_v51 = vmul.f32 1.442695, %v1238_v42  ;;  %v1169_v39 = vsel %vm1138_vm1, %v3643_v32, -inf  ;;  %v1181_v7 = vsel %vm1138_vm1, %v3698_v49, -inf }
 0x1fb   :  { %v1337_v18 = vsel %vm1138_vm1, %v3632_v3, 0.0 }
 0x1fc   :  { %2886 = vpow2.f32 %v1273_v51  ;;  %1338 = vadd.xlane.f32.xlu2 %v1337_v18  ;;  %1167 = vmax.xlane.f32.xlu0 %v1166_v36 }
 0x1ff   :  { %v1153_v54 = vpop.xlane.xlu2 %1152  ;;  %2722 = vmatmul.msk.f32.gmra.mxu2 %vm98_vm0, %v3312_v46  ;;  %v1187_v46 = vsel %vm1138_vm1, %v3695_v6, -inf }
 0x200   :  { %v1239_v56 = vsub.f32 %v3501_v2, %v1153_v54  ;;  %v3646_v45 = vpop.f32.mrf.mxu3  ;;  %v3657_v2 = vmul.f32 0.35355338, %v3577_v5  ;;  %v3671_v5 = vperm.slane %v3318_v47, 2 }
 0x202   :  { %v3648_v57 = vpop.eup %2886  ;;  %v1275_v50 = vmul.f32 1.442695, %v1239_v56  ;;  %v1175_v41 = vsel %vm1138_vm1, %v3657_v2, -inf  ;;  %v457_v13 = vadd.f32 %v456_v23, %v3671_v5 }
 0x203   :  { %v1340_v60 = vsel %vm1138_vm1, %v3648_v57, 0.0 }
 0x204   :  { %2888 = vpow2.f32 %v1275_v50  ;;  %1341 = vadd.xlane.f32.xlu1 %v1340_v60  ;;  %1170 = vmax.xlane.f32.xlu0 %v1169_v39 }
 0x207   :  { %v1156_v62 = vpop.xlane.xlu2 %1155  ;;  %2723 = vmatmul.msk.f32.gmra.mxu2 %vm98_vm0, %v3327_v52 }
 0x208   :  { %v1240_v0 = vsub.f32 %v3511_v40, %v1156_v62  ;;  %v3660_v30 = vpop.f32.mrf.mxu3  ;;  %v459_v40 = vpop.f32.mrf.mxu2 }
 0x209   :  { %v460_v9 = vadd.f32 %v459_v40, %v3671_v5 }
 0x20a   :  { %v3662_v20 = vpop.eup %2888  ;;  %v1277_v59 = vmul.f32 1.442695, %v1240_v0 }
 0x20b   :  { %v1343_v48 = vsel %vm1138_vm1, %v3662_v20, 0.0  ;;  %1956 = vmatpush.msra.mxu1 %v460_v9 }
 0x20c   :  { %2890 = vpow2.f32 %v1277_v59  ;;  %1344 = vadd.xlane.f32.xlu2 %v1343_v48  ;;  %1176 = vmax.xlane.f32.xlu0 %v1175_v41  ;;  %v3730_v59 = vmul.f32 0.35355338, %v3603_v34 }
 0x20d   :  { %1957 = vmatpush.msra.mxu1 %v457_v13 }
 0x20e   :  { %v1184_v13 = vsel %vm1138_vm1, %v3730_v59, -inf }
 0x20f   :  { %v1159_v37 = vpop.xlane.xlu0 %1158  ;;  %2724 = vmatmul.msk.f32.gmra.mxu2 %vm98_vm0, %v3340_v58 }
 0x210   :  { %v1241_v43 = vsub.f32 %v3520_v10, %v1159_v37  ;;  %v3682_v26 = vpop.f32.mrf.mxu3  ;;  %v1178_v10 = vsel %vm1138_vm1, %v3679_v15, -inf  ;;  %v462_v8 = vpop.f32.mrf.mxu2 }
 0x211   :  { %v463_v23 = vadd.f32 %v462_v8, %v3671_v5 }
 0x212   :  { %v3684_v55 = vpop.eup %2890  ;;  %v1279_v47 = vmul.f32 1.442695, %v1241_v43 }
 0x213   :  { %v1346_v4 = vsel %vm1138_vm1, %v3684_v55, 0.0 }
 0x214   :  { %2892 = vpow2.f32 %v1279_v47  ;;  %1347 = vadd.xlane.f32.xlu1 %v1346_v4  ;;  %1173 = vmax.xlane.f32.xlu2 %v1172_v17 }
 0x215   :  { %1179 = vmax.xlane.f32.xlu0 %v1178_v10 }
 0x217   :  { %v1162_v16 = vpop.xlane.xlu1 %1161  ;;  %2725 = vmatmul.msk.f32.gmra.mxu2 %vm98_vm0, %v3350_v63 }
 0x218   :  { %v1242_v42 = vsub.f32 %v3531_v1, %v1162_v16  ;;  %v3701_v51 = vpop.f32.mrf.mxu3  ;;  %v3714_v1 = vmul.f32 0.35355338, %v3617_v11  ;;  %v465_v54 = vpop.f32.mrf.mxu2 }
 0x219   :  { %v466_v50 = vadd.f32 %v465_v54, %v3671_v5 }
 0x21a   :  { %v3705_v18 = vpop.eup %2892  ;;  %v1281_v36 = vmul.f32 1.442695, %v1242_v42  ;;  %v1190_v52 = vsel %vm1138_vm1, %v3714_v1, -inf  ;;  %v454_v42 = vadd.f32 %v3640_v28, %v3671_v5 }
 0x21b   :  { %v1349_v21 = vsel %vm1138_vm1, %v3705_v18, 0.0  ;;  %1985 = vmatpush.msra.mxu2 %v466_v50 }
 0x21c   :  { %2894 = vpow2.f32 %v1281_v36  ;;  %1350 = vadd.xlane.f32.xlu2 %v1349_v21  ;;  %1188 = vmax.xlane.f32.xlu1 %v1187_v46  ;;  %v451_v46 = vadd.f32 %v3625_v61, %v3671_v5 }
 0x21d   :  { %1182 = vmax.xlane.f32.xlu0 %v1181_v7  ;;  %1986 = vmatpush.msra.mxu2 %v463_v23 }
 0x21e   :  { %1927 = vmatpush.msrb.mxu0 %v454_v42 }
 0x21f   :  { %v1165_v56 = vpop.xlane.xlu1 %1164  ;;  %2726 = vmatmul.msk.f32.gmra.mxu2 %vm98_vm0, %v3228_v24 }
 0x220   :  { %v1243_v60 = vsub.f32 %v3541_v12, %v1165_v56  ;;  %v3718_v39 = vpop.f32.mrf.mxu3  ;;  %v468_v12 = vpop.f32.mrf.mxu2  ;;  %1928 = vmatpush.msrb.mxu0 %v451_v46 }
 0x221   :  { %v469_v9 = vadd.f32 %v468_v12, %v3671_v5 }
 0x222   :  { %v3723_v62 = vpop.eup %2894  ;;  %v1283_v0 = vmul.f32 1.442695, %v1243_v60 }
 0x223   :  { %v1352_v11 = vsel %vm1138_vm1, %v3723_v62, 0.0 }
 0x224   :  { %2896 = vpow2.f32 %v1283_v0  ;;  %1353 = vadd.xlane.f32.xlu2 %v1352_v11  ;;  %1191 = vmax.xlane.f32.xlu1 %v1190_v52 }
 0x227   :  { %2727 = vmatmul.msk.f32.gmra.mxu2 %vm98_vm0, %v3234_v25 }
 0x228   :  { %v995_v48 = vpop.f32.mrf.mxu3  ;;  %v471_v34 = vpop.f32.mrf.mxu2 }
 0x229   :  { %v3732_v41 = vmul.f32 0.35355338, %v995_v48  ;;  %v472_v43 = vadd.f32 %v471_v34, %v3671_v5 }
 0x22a   :  { %v3734_v40 = vpop.eup %2896 }
 0x22b   :  { %v1355_v37 = vsel %vm1138_vm1, %v3734_v40, 0.0  ;;  %v1211_v58 = vsel %vm1138_vm1, %v3732_v41, -inf  ;;  %2014 = vmatpush.msrb.mxu3 %v472_v43 }
 0x22c   :  { %1356 = vadd.xlane.f32.xlu0 %v1355_v37  ;;  %1185 = vmax.xlane.f32.xlu2 %v1184_v13 }
 0x22d   :  { %1212 = vmax.xlane.f32.xlu1 %v1211_v58  ;;  %2015 = vmatpush.msrb.mxu3 %v469_v9 }
 0x22f   :  { %2728 = vmatmul.msk.f32.gmra.mxu2 %vm98_vm0, %v3242_v27 }
 0x230   :  { %v998_v47 = vpop.f32.mrf.mxu3  ;;  %v474_v63 = vpop.f32.mrf.mxu2 }
 0x231   :  { %v3746_v4 = vmul.f32 0.35355338, %v998_v47  ;;  %v475_v25 = vadd.f32 %v474_v63, %v3671_v5 }
 0x233   :  { %v1214_v17 = vsel %vm1138_vm1, %v3746_v4, -inf }
 0x235   :  { %1215 = vmax.xlane.f32.xlu1 %v1214_v17 }
 0x237   :  { %2729 = vmatmul.msk.f32.gmra.mxu2 %vm98_vm0, %v3250_v29 }
 0x238   :  { %v477_v10 = vpop.f32.mrf.mxu2 }
 0x239   :  { %v478_v24 = vadd.f32 %v477_v10, %v3671_v5 }
 0x23b   :  { %2043 = vmatpush.msra.mxu0 %v478_v24 }
 0x23d   :  { %2044 = vmatpush.msra.mxu0 %v475_v25 }
 0x23f   :  { %2730 = vmatmul.msk.f32.gmra.mxu2 %vm98_vm0, %v3258_v31 }
 0x240   :  { %v480_v8 = vpop.f32.mrf.mxu2 }
 0x241   :  { %v481_v36 = vadd.f32 %v480_v8, %v3671_v5 }
 0x247   :  { %2731 = vmatmul.msk.f32.gmra.mxu2 %vm98_vm0, %v3266_v33 }
 0x248   :  { %v483_v16 = vpop.f32.mrf.mxu2 }
 0x249   :  { %v484_v27 = vadd.f32 %v483_v16, %v3671_v5 }
 0x24b   :  { %2072 = vmatpush.msrb.mxu1 %v484_v27 }
 0x24d   :  { %2073 = vmatpush.msrb.mxu1 %v481_v36 }
 0x24f   :  { %2732 = vmatmul.msk.f32.gmra.mxu2 %vm98_vm0, %v3274_v35 }
 0x250   :  { %v486_v29 = vpop.f32.mrf.mxu2 }
 0x251   :  { %v487_v21 = vadd.f32 %v486_v29, %v3671_v5 }
 0x257   :  { %2733 = vmatmul.msk.f32.gmra.mxu2 %vm98_vm0, %v3286_v38 }
 0x258   :  { %v489_v61 = vpop.f32.mrf.mxu2 }
 0x259   :  { %v490_v7 = vadd.f32 %v489_v61, %v3671_v5 }
 0x25b   :  { %2101 = vmatpush.msrb.mxu2 %v490_v7 }
 0x25d   :  { %2102 = vmatpush.msrb.mxu2 %v487_v21 }
 0x25f   :  { %v1333_v28 = vpop.xlane.xlu2 %1332 }
 0x260   :  { %2898 = vrcp.f32 %v1333_v28  ;;  %v492_v50 = vpop.f32.mrf.mxu2  ;;  %v1438_v33 = vand.u32 2147483648, %v1333_v28  ;;  %v1436_v23 = vand.u32 2147483647, %v1333_v28  ;;  %vm1432_vm3 = vweird.f32 %v1333_v28 }
 0x261   :  { %v493_v16 = vadd.f32 %v492_v50, %v3671_v5 }
 0x262   :  { %v1439_v11 = vor.u32 1.1754944e-38, %v1438_v33  ;;  %vm1437_vm5 = vcmp.eq.f32.partialorder %v1436_v23, 8.507059e+37 }
 0x266   :  { %v2899_v54 = vpop.eup %2898 }
 0x267   :  { %v1428_v31 = vmul.f32 %v2899_v54, %v1333_v28  ;;  %v1336_v56 = vpop.xlane.xlu0 %1335  ;;  %vm1433_vm2 = vweird.f32 %v2899_v54 }
 0x268   :  { %2900 = vrcp.f32 %v1336_v56  ;;  %vm1434_vm4 = vmor %vm1432_vm3, %vm1433_vm2  ;;  %v495_v58 = vpop.f32.mrf.mxu2  ;;  %v1453_v17 = vand.u32 2147483648, %v1336_v56  ;;  %vm1447_vm7 = vweird.f32 %v1336_v56  ;;  %v1451_v10 = vand.u32 2147483647, %v1336_v56 }
 0x269   :  { %v1429_v60 = vsub.f32 1.0, %v1428_v31  ;;  %v496_v42 = vadd.f32 %v495_v58, %v3671_v5 }
 0x26a   :  { %vm1452_vm9 = vcmp.eq.f32.partialorder %v1451_v10, 8.507059e+37 }
 0x26b   :  { %v1430_v52 = vmul.f32 %v2899_v54, %v1429_v60  ;;  %2130 = vmatpush.msra.mxu3 %v496_v42 }
 0x26d   :  { %v1431_v35 = vadd.f32 %v2899_v54, %v1430_v52  ;;  %2131 = vmatpush.msra.mxu3 %v493_v16 }
 0x26e   :  { %v2901_v0 = vpop.eup %2900 }
 0x26f   :  { %v1443_v12 = vmul.f32 %v2901_v0, %v1336_v56  ;;  %v1339_v48 = vpop.xlane.xlu2 %1338  ;;  %v1168_v37 = vpop.xlane.xlu0 %1167  ;;  %v1435_v13 = vsel %vm1434_vm4, %v2899_v54, %v1431_v35  ;;  %vm1448_vm6 = vweird.f32 %v2901_v0 }
 0x270   :  { %2902 = vrcp.f32 %v1339_v48  ;;  %v1244_v9 = vsub.f32 %v3627_v19, %v1168_v37  ;;  %v1440_v43 = vsel %vm1437_vm5, %v1439_v11, %v1435_v13  ;;  %vm1449_vm8 = vmor %vm1447_vm7, %vm1448_vm6  ;;  %v1454_v19 = vor.u32 1.1754944e-38, %v1453_v17  ;;  %v498_v27 = vpop.f32.mrf.mxu2 }
 0x271   :  { %v1444_v34 = vsub.f32 1.0, %v1443_v12  ;;  %v1441_v47 = vmul.f32 %v3610_v53, %v1440_v43  ;;  %v1468_v21 = vand.u32 2147483648, %v1339_v48  ;;  %v1466_v56 = vand.u32 2147483647, %v1339_v48 }
 0x272   :  { %v1285_v63 = vmul.f32 1.442695, %v1244_v9  ;;  %vm1462_vm11 = vweird.f32 %v1339_v48 }
 0x273   :  { %v1445_v38 = vmul.f32 %v2901_v0, %v1444_v34  ;;  %2798 = vmatmul.msk.f32.vlgmr.msrb.gmra.mxu0 %vm1138_vm1, %v1441_v47  ;;  %v1469_v33 = vor.u32 1.1754944e-38, %v1468_v21  ;;  %vm1467_vm13 = vcmp.eq.f32.partialorder %v1466_v56, 8.507059e+37 }
 0x274   :  { %2904 = vpow2.f32 %v1285_v63 }
 0x275   :  { %v1446_v8 = vadd.f32 %v2901_v0, %v1445_v38 }
 0x276   :  { %v2903_v24 = vpop.eup %2902 }
 0x277   :  { %v1458_v46 = vmul.f32 %v2903_v24, %v1339_v48  ;;  %v1342_v25 = vpop.xlane.xlu1 %1341  ;;  %v1171_v53 = vpop.xlane.xlu0 %1170  ;;  %v1450_v36 = vsel %vm1449_vm8, %v2901_v0, %v1446_v8  ;;  %vm1463_vm10 = vweird.f32 %v2903_v24 }
 0x278   :  { %2906 = vrcp.f32 %v1342_v25  ;;  %v1245_v28 = vsub.f32 %v3643_v32, %v1171_v53  ;;  %v1455_v61 = vsel %vm1452_vm9, %v1454_v19, %v1450_v36  ;;  %vm1464_vm12 = vmor %vm1462_vm11, %vm1463_vm10  ;;  %v501_v12 = vpop.f32.mrf.mxu2  ;;  %v1483_v9 = vand.u32 2147483648, %v1342_v25 }
 0x279   :  { %v1459_v29 = vsub.f32 1.0, %v1458_v46  ;;  %v1456_v7 = vmul.f32 %v3619_v44, %v1455_v61  ;;  %vm1477_vm15 = vweird.f32 %v1342_v25  ;;  %v1481_v47 = vand.u32 2147483647, %v1342_v25 }
 0x27a   :  { %v3783_v54 = vpop.eup %2904  ;;  %v1287_v50 = vmul.f32 1.442695, %v1245_v28  ;;  %v1484_v8 = vor.u32 1.1754944e-38, %v1483_v9  ;;  %v3806_v46 = vmul.f32 0.35355338, %v3630_v22 }
 0x27b   :  { %v1460_v31 = vmul.f32 %v2903_v24, %v1459_v29  ;;  %2799 = vmatmul.msk.f32.gmra.mxu0 %vm1138_vm1, %v1456_v7  ;;  %v1358_v60 = vsel %vm1138_vm1, %v3783_v54, 0.0  ;;  %vm1482_vm3 = vcmp.eq.f32.partialorder %v1481_v47, 8.507059e+37 }
 0x27c   :  { %2908 = vpow2.f32 %v1287_v50  ;;  %1359 = vadd.xlane.f32.xlu2 %v1358_v60 }
 0x27d   :  { %v1461_v52 = vadd.f32 %v2903_v24, %v1460_v31 }
 0x27e   :  { %v2907_v32 = vpop.eup %2906 }
 0x27f   :  { %v1465_v23 = vsel %vm1464_vm12, %v2903_v24, %v1461_v52  ;;  %v1473_v44 = vmul.f32 %v2907_v32, %v1342_v25  ;;  %v1345_v35 = vpop.xlane.xlu2 %1344  ;;  %v1177_v0 = vpop.xlane.xlu0 %1176  ;;  %vm1478_vm14 = vweird.f32 %v2907_v32 }
 0x280   :  { %v1470_v11 = vsel %vm1467_vm13, %v1469_v33, %v1465_v23  ;;  %2910 = vrcp.f32 %v1345_v35  ;;  %v1247_v58 = vsub.f32 %v3657_v2, %v1177_v0  ;;  %v502_v2 = vadd.f32 %v501_v12, %v3671_v5  ;;  %vm3797_vm2 = vmor %vm1477_vm15, %vm1478_vm14  ;;  %v504_v53 = vpop.f32.mrf.mxu2 }
 0x281   :  { %v1471_v37 = vmul.f32 %v3632_v3, %v1470_v11  ;;  %v1474_v13 = vsub.f32 1.0, %v1473_v44  ;;  %v499_v3 = vadd.f32 %v498_v27, %v3671_v5  ;;  %v1496_v61 = vand.u32 2147483647, %v1345_v35 }
 0x282   :  { %v3790_v34 = vpop.eup %2908  ;;  %v1291_v43 = vmul.f32 1.442695, %v1247_v58  ;;  %2159 = vmatpush.msrb.mxu0 %v502_v2  ;;  %v1498_v21 = vand.u32 2147483648, %v1345_v35  ;;  %vm1492_vm5 = vweird.f32 %v1345_v35  ;;  %v3823_v0 = vmul.f32 0.35355338, %v3646_v45 }
 0x283   :  { %v1475_v48 = vmul.f32 %v2907_v32, %v1474_v13  ;;  %2800 = vmatmul.msk.f32.vlgmr.msra.gmra.mxu1 %vm1138_vm1, %v1471_v37  ;;  %v1361_v38 = vsel %vm1138_vm1, %v3790_v34, 0.0  ;;  %vm1497_vm7 = vcmp.eq.f32.partialorder %v1496_v61, 8.507059e+37  ;;  %v505_v9 = vadd.f32 %v504_v53, %v3671_v5 }
 0x284   :  { %2912 = vpow2.f32 %v1291_v43  ;;  %1362 = vadd.xlane.f32.xlu0 %v1361_v38  ;;  %2160 = vmatpush.msrb.mxu0 %v499_v3  ;;  %v1499_v52 = vor.u32 1.1754944e-38, %v1498_v21 }
 0x285   :  { %v1476_v17 = vadd.f32 %v2907_v32, %v1475_v48 }
 0x286   :  { %v2911_v63 = vpop.eup %2910 }
 0x287   :  { %v1488_v16 = vmul.f32 %v2911_v63, %v1345_v35  ;;  %v3801_v42 = vpop.xlane.xlu1 %1347  ;;  %v1174_v24 = vpop.xlane.xlu2 %1173  ;;  %v1480_v19 = vsel %vm3797_vm2, %v2907_v32, %v1476_v17  ;;  %vm1493_vm4 = vweird.f32 %v2911_v63 }
 0x288   :  { %2914 = vrcp.f32 %v3801_v42  ;;  %v1180_v25 = vpop.xlane.xlu0 %1179  ;;  %v1246_v27 = vsub.f32 %v3674_v14, %v1174_v24  ;;  %v1485_v28 = vsel %vm1482_vm3, %v1484_v8, %v1480_v19  ;;  %v1193_v14 = vsel %vm1138_vm1, %v3806_v46, -inf  ;;  %vm1494_vm6 = vmor %vm1492_vm5, %vm1493_vm4  ;;  %v507_v12 = vpop.f32.mrf.mxu2 }
 0x289   :  { %v1489_v36 = vsub.f32 1.0, %v1488_v16  ;;  %v1248_v29 = vsub.f32 %v3679_v15, %v1180_v25  ;;  %v1486_v7 = vmul.f32 %v3648_v57, %v1485_v28  ;;  %v508_v43 = vadd.f32 %v507_v12, %v3671_v5 }
 0x28a   :  { %v3812_v31 = vpop.eup %2912  ;;  %v1289_v56 = vmul.f32 1.442695, %v1246_v27  ;;  %v1513_v38 = vand.u32 2147483648, %v3801_v42  ;;  %vm1507_vm9 = vweird.f32 %v3801_v42 }
 0x28b   :  { %v1490_v22 = vmul.f32 %v2911_v63, %v1489_v36  ;;  %v1293_v50 = vmul.f32 1.442695, %v1248_v29  ;;  %2801 = vmatmul.msk.f32.gmra.mxu1 %vm1138_vm1, %v1486_v7  ;;  %v1367_v60 = vsel %vm1138_vm1, %v3812_v31, 0.0 }
 0x28c   :  { %2916 = vpow2.f32 %v1289_v56  ;;  %1368 = vadd.xlane.f32.xlu2 %v1367_v60  ;;  %1194 = vmax.xlane.f32.xlu0 %v1193_v14  ;;  %v1514_v16 = vor.u32 1.1754944e-38, %v1513_v38 }
 0x28d   :  { %v1491_v15 = vadd.f32 %v2911_v63, %v1490_v22  ;;  %2918 = vpow2.f32 %v1293_v50  ;;  %2188 = vmatpush.msra.mxu1 %v508_v43 }
 0x28e   :  { %v2915_v57 = vpop.eup %2914 }
 0x28f   :  { %v1495_v32 = vsel %vm1494_vm6, %v2911_v63, %v1491_v15  ;;  %v1503_v33 = vmul.f32 %v2915_v57, %v3801_v42  ;;  %v3820_v23 = vpop.xlane.xlu2 %1350  ;;  %v1189_v44 = vpop.xlane.xlu1 %1188  ;;  %vm1508_vm8 = vweird.f32 %v2915_v57  ;;  %2189 = vmatpush.msra.mxu1 %v505_v9 }
 0x290   :  { %v1500_v11 = vsel %vm1497_vm7, %v1499_v52, %v1495_v32  ;;  %2920 = vrcp.f32 %v3820_v23  ;;  %v1183_v35 = vpop.xlane.xlu0 %1182  ;;  %v1251_v48 = vsub.f32 %v3695_v6, %v1189_v44  ;;  %v1196_v6 = vsel %vm1138_vm1, %v3823_v0, -inf  ;;  %vm1509_vm10 = vmor %vm1507_vm9, %vm1508_vm8 }
 0x291   :  { %v1501_v37 = vmul.f32 %v3662_v20, %v1500_v11  ;;  %v1504_v13 = vsub.f32 1.0, %v1503_v33  ;;  %v1249_v58 = vsub.f32 %v3698_v49, %v1183_v35  ;;  %v1511_v20 = vand.u32 2147483647, %v3801_v42  ;;  %v510_v42 = vpop.f32.mrf.mxu2 }
 0x292   :  { %v3831_v47 = vpop.eup %2916  ;;  %v1299_v49 = vmul.f32 1.442695, %v1251_v48  ;;  %v1528_v28 = vand.u32 2147483648, %v3820_v23  ;;  %v1526_v22 = vand.u32 2147483647, %v3820_v23  ;;  %vm1522_vm13 = vweird.f32 %v3820_v23 }
 0x293   :  { %v1505_v45 = vmul.f32 %v2915_v57, %v1504_v13  ;;  %v1295_v17 = vmul.f32 1.442695, %v1249_v58  ;;  %2802 = vmatmul.msk.f32.vlgmr.msra.gmra.mxu2 %vm1138_vm1, %v1501_v37  ;;  %v3835_v3 = vpop.eup %2918  ;;  %v1364_v2 = vsel %vm1138_vm1, %v3831_v47, 0.0  ;;  %vm1512_vm11 = vcmp.eq.f32.partialorder %v1511_v20, 8.507059e+37 }
 0x294   :  { %v1370_v10 = vsel %vm1138_vm1, %v3835_v3, 0.0  ;;  %1197 = vmax.xlane.f32.xlu0 %v1196_v6  ;;  %1365 = vadd.xlane.f32.xlu1 %v1364_v2  ;;  %v1529_v15 = vor.u32 1.1754944e-38, %v1528_v28  ;;  %vm1527_vm15 = vcmp.eq.f32.partialorder %v1526_v22, 8.507059e+37  ;;  %v3869_v35 = vmul.f32 0.35355338, %v3660_v30 }
 0x295   :  { %v1506_v63 = vadd.f32 %v2915_v57, %v1505_v45  ;;  %2922 = vpow2.f32 %v1295_v17  ;;  %1371 = vadd.xlane.f32.xlu2 %v1370_v10  ;;  %v511_v9 = vadd.f32 %v510_v42, %v3671_v5  ;;  %v3888_v10 = vmul.f32 0.35355338, %v3682_v26 }
 0x296   :  { %v2921_v8 = vpop.eup %2920  ;;  %2924 = vpow2.f32 %v1299_v49 }
 0x297   :  { %v1518_v24 = vmul.f32 %v2921_v8, %v3820_v23  ;;  %v3847_v19 = vpop.xlane.xlu2 %1353  ;;  %v1192_v25 = vpop.xlane.xlu1 %1191  ;;  %v1510_v53 = vsel %vm1509_vm10, %v2915_v57, %v1506_v63  ;;  %vm1523_vm12 = vweird.f32 %v2921_v8 }
 0x298   :  { %2926 = vrcp.f32 %v3847_v19  ;;  %v1252_v27 = vsub.f32 %v3714_v1, %v1192_v25  ;;  %v1515_v29 = vsel %vm1512_vm11, %v1514_v16, %v1510_v53  ;;  %vm1524_vm14 = vmor %vm1522_vm13, %vm1523_vm12  ;;  %v1543_v58 = vand.u32 2147483648, %v3847_v19 }
 0x299   :  { %v1519_v36 = vsub.f32 1.0, %v1518_v24  ;;  %v1516_v61 = vmul.f32 %v3684_v55, %v1515_v29  ;;  %v513_v11 = vpop.f32.mrf.mxu2  ;;  %v1541_v30 = vand.u32 2147483647, %v3847_v19  ;;  %vm1537_vm3 = vweird.f32 %v3847_v19 }
 0x29a   :  { %v1301_v56 = vmul.f32 1.442695, %v1252_v27  ;;  %v514_v43 = vadd.f32 %v513_v11, %v3671_v5  ;;  %v1544_v6 = vor.u32 1.1754944e-38, %v1543_v58 }
 0x29b   :  { %v3853_v21 = vpop.eup %2922  ;;  %v1520_v7 = vmul.f32 %v2921_v8, %v1519_v36  ;;  %2803 = vmatmul.msk.f32.gmra.mxu2 %vm1138_vm1, %v1516_v61  ;;  %vm1542_vm5 = vcmp.eq.f32.partialorder %v1541_v30, 8.507059e+37 }
 0x29c   :  { %v3856_v50 = vpop.eup %2924  ;;  %v1373_v60 = vsel %vm1138_vm1, %v3853_v21, 0.0  ;;  %2928 = vpow2.f32 %v1301_v56  ;;  %2217 = vmatpush.msra.mxu2 %v514_v43 }
 0x29d   :  { %v1521_v1 = vadd.f32 %v2921_v8, %v1520_v7  ;;  %1374 = vadd.xlane.f32.xlu0 %v1373_v60  ;;  %v1379_v55 = vsel %vm1138_vm1, %v3856_v50, 0.0  ;;  %v3907_v60 = vmul.f32 0.35355338, %v3718_v39 }
 0x29e   :  { %v2927_v14 = vpop.eup %2926  ;;  %1380 = vadd.xlane.f32.xlu1 %v1379_v55  ;;  %2218 = vmatpush.msra.mxu2 %v511_v9 }
 0x29f   :  { %v1525_v57 = vsel %vm1524_vm14, %v2921_v8, %v1521_v1  ;;  %v1533_v52 = vmul.f32 %v2927_v14, %v3847_v19  ;;  %v3865_v32 = vpop.xlane.xlu0 %1356  ;;  %v1186_v33 = vpop.xlane.xlu2 %1185  ;;  %vm1538_vm2 = vweird.f32 %v2927_v14  ;;  %v1208_v39 = vsel %vm1138_vm1, %v3907_v60, -inf }
 0x2a0   :  { %v1530_v44 = vsel %vm1527_vm15, %v1529_v15, %v1525_v57  ;;  %2930 = vrcp.f32 %v3865_v32  ;;  %v1213_v23 = vpop.xlane.xlu1 %1212  ;;  %v1250_v13 = vsub.f32 %v3730_v59, %v1186_v33  ;;  %vm1539_vm4 = vmor %vm1537_vm3, %vm1538_vm2  ;;  %v1558_v42 = vand.u32 2147483648, %v3865_v32 }
 0x2a1   :  { %v1531_v12 = vmul.f32 %v3705_v18, %v1530_v44  ;;  %v1534_v37 = vsub.f32 1.0, %v1533_v52  ;;  %v1259_v48 = vsub.f32 %v3732_v41, %v1213_v23  ;;  %v1199_v41 = vsel %vm1138_vm1, %v3869_v35, -inf  ;;  %v516_v24 = vpop.f32.mrf.mxu2 }
 0x2a2   :  { %v3877_v45 = vpop.eup %2928  ;;  %v1297_v17 = vmul.f32 1.442695, %v1250_v13  ;;  %v1556_v29 = vand.u32 2147483647, %v3865_v32  ;;  %vm1552_vm7 = vweird.f32 %v3865_v32  ;;  %v1559_v22 = vor.u32 1.1754944e-38, %v1558_v42 }
 0x2a3   :  { %v1535_v38 = vmul.f32 %v2927_v14, %v1534_v37  ;;  %2804 = vmatmul.msk.f32.vlgmr.msrb.gmra.mxu3 %vm1138_vm1, %v1531_v12  ;;  %v1315_v18 = vmul.f32 1.442695, %v1259_v48  ;;  %v1382_v59 = vsel %vm1138_vm1, %v3877_v45, 0.0  ;;  %v517_v57 = vadd.f32 %v516_v24, %v3671_v5 }
 0x2a4   :  { %2932 = vpow2.f32 %v1297_v17  ;;  %1383 = vadd.xlane.f32.xlu2 %v1382_v59  ;;  %vm1557_vm9 = vcmp.eq.f32.partialorder %v1556_v29, 8.507059e+37 }
 0x2a5   :  { %v1536_v20 = vadd.f32 %v2927_v14, %v1535_v38  ;;  %2934 = vpow2.f32 %v1315_v18  ;;  %v3926_v38 = vpop.f32.mrf.mxu3 }
 0x2a6   :  { %v2931_v49 = vpop.eup %2930  ;;  %1200 = vmax.xlane.f32.xlu1 %v1199_v41 }
 0x2a7   :  { %v1548_v2 = vmul.f32 %v2931_v49, %v3865_v32  ;;  %v1540_v63 = vsel %vm1539_vm4, %v2927_v14, %v1536_v20  ;;  %vm1553_vm6 = vweird.f32 %v2931_v49  ;;  %v3910_v14 = vmul.f32 0.35355338, %v3701_v51 }
 0x2a8   :  { %v1216_v8 = vpop.xlane.xlu1 %1215  ;;  %v1545_v16 = vsel %vm1542_vm5, %v1544_v6, %v1540_v63  ;;  %vm1554_vm8 = vmor %vm1552_vm7, %vm1553_vm6 }
 0x2a9   :  { %v1549_v19 = vsub.f32 1.0, %v1548_v2  ;;  %v1260_v25 = vsub.f32 %v3746_v4, %v1216_v8  ;;  %v1546_v53 = vmul.f32 %v3723_v62, %v1545_v16  ;;  %v1202_v4 = vsel %vm1138_vm1, %v3888_v10, -inf  ;;  %v519_v55 = vpop.f32.mrf.mxu2 }
 0x2aa   :  { %v3893_v36 = vpop.eup %2932  ;;  %v520_v52 = vadd.f32 %v519_v55, %v3671_v5  ;;  %v1205_v51 = vsel %vm1138_vm1, %v3910_v14, -inf }
 0x2ab   :  { %v1550_v27 = vmul.f32 %v2931_v49, %v1549_v19  ;;  %v1317_v28 = vmul.f32 1.442695, %v1260_v25  ;;  %2805 = vmatmul.msk.f32.gmra.mxu3 %vm1138_vm1, %v1546_v53  ;;  %v3897_v26 = vpop.eup %2934  ;;  %v1376_v61 = vsel %vm1138_vm1, %v3893_v36, 0.0 }
 0x2ac   :  { %1377 = vadd.xlane.f32.xlu0 %v1376_v61  ;;  %v1403_v7 = vsel %vm1138_vm1, %v3897_v26, 0.0  ;;  %2246 = vmatpush.msrb.mxu3 %v520_v52 }
 0x2ad   :  { %v1551_v62 = vadd.f32 %v2931_v49, %v1550_v27  ;;  %2936 = vpow2.f32 %v1317_v28  ;;  %1404 = vadd.xlane.f32.xlu2 %v1403_v7  ;;  %v3932_v28 = vpop.f32.mrf.mxu3 }
 0x2ae   :  { %1203 = vmax.xlane.f32.xlu1 %v1202_v4  ;;  %2247 = vmatpush.msrb.mxu3 %v517_v57 }
 0x2af   :  { %v1555_v56 = vsel %vm1554_vm8, %v2931_v49, %v1551_v62 }
 0x2b0   :  { %v1560_v1 = vsel %vm1557_vm9, %v1559_v22, %v1555_v56 }
 0x2b1   :  { %v1561_v15 = vmul.f32 %v3734_v40, %v1560_v1  ;;  %v522_v40 = vpop.f32.mrf.mxu2 }
 0x2b2   :  { %v523_v23 = vadd.f32 %v522_v40, %v3671_v5 }
 0x2b3   :  { %v3915_v32 = vpop.eup %2936  ;;  %2806 = vmatmul.msk.f32.vlgmr.msra.gmra.mxu0 %vm1138_vm1, %v1561_v15 }
 0x2b4   :  { %v1406_v33 = vsel %vm1138_vm1, %v3915_v32, 0.0  ;;  %1209 = vmax.xlane.f32.xlu0 %v1208_v39 }
 0x2b5   :  { %1407 = vadd.xlane.f32.xlu2 %v1406_v33 }
 0x2b6   :  { %1206 = vmax.xlane.f32.xlu1 %v1205_v51 }
 0x2b9   :  { %v525_v44 = vpop.f32.mrf.mxu2 }
 0x2ba   :  { %v526_v11 = vadd.f32 %v525_v44, %v3671_v5 }
 0x2bc   :  { %2275 = vmatpush.msra.mxu0 %v526_v11 }
 0x2be   :  { %2276 = vmatpush.msra.mxu0 %v523_v23 }
 0x2c1   :  { %v528_v12 = vpop.f32.mrf.mxu2 }
 0x2c2   :  { %v529_v39 = vadd.f32 %v528_v12, %v3671_v5 }
 0x2c9   :  { %v531_v58 = vpop.f32.mrf.mxu2 }
 0x2d1   :  { %v3928_v8 = vpop.f32.mrf.mxu2 }
 0x2d9   :  { %v537_v44 = vpop.f32.mrf.mxu2 }
 0x2ef   :  { %v1360_v37 = vpop.xlane.xlu2 %1359 }
 0x2f0   :  { %2938 = vrcp.f32 %v1360_v37  ;;  %v1573_v17 = vand.u32 2147483648, %v1360_v37  ;;  %v1571_v18 = vand.u32 2147483647, %v1360_v37  ;;  %vm1567_vm11 = vweird.f32 %v1360_v37 }
 0x2f2   :  { %v1574_v41 = vor.u32 1.1754944e-38, %v1573_v17  ;;  %vm1572_vm13 = vcmp.eq.f32.partialorder %v1571_v18, 8.507059e+37 }
 0x2f6   :  { %v2939_v13 = vpop.eup %2938 }
 0x2f7   :  { %v1563_v48 = vmul.f32 %v2939_v13, %v1360_v37  ;;  %v1363_v9 = vpop.xlane.xlu0 %1362  ;;  %vm1568_vm10 = vweird.f32 %v2939_v13 }
 0x2f8   :  { %2940 = vrcp.f32 %v1363_v9  ;;  %vm1569_vm12 = vmor %vm1567_vm11, %vm1568_vm10  ;;  %v1588_v25 = vand.u32 2147483648, %v1363_v9  ;;  %v1586_v27 = vand.u32 2147483647, %v1363_v9  ;;  %vm1582_vm15 = vweird.f32 %v1363_v9 }
 0x2f9   :  { %v1564_v43 = vsub.f32 1.0, %v1563_v48 }
 0x2fa   :  { %v1589_v62 = vor.u32 1.1754944e-38, %v1588_v25  ;;  %vm1587_vm3 = vcmp.eq.f32.partialorder %v1586_v27, 8.507059e+37 }
 0x2fb   :  { %v1565_v30 = vmul.f32 %v2939_v13, %v1564_v43 }
 0x2fd   :  { %v1566_v59 = vadd.f32 %v2939_v13, %v1565_v30  ;;  %v538_v30 = vadd.f32 %v537_v44, %v3671_v5 }
 0x2fe   :  { %v2941_v20 = vpop.eup %2940 }
 0x2ff   :  { %v1578_v49 = vmul.f32 %v2941_v20, %v1363_v9  ;;  %v1369_v6 = vpop.xlane.xlu2 %1368  ;;  %v1195_v2 = vpop.xlane.xlu0 %1194  ;;  %v1570_v63 = vsel %vm1569_vm12, %v2939_v13, %v1566_v59  ;;  %vm1583_vm14 = vweird.f32 %v2941_v20 }
 0x300   :  { %2942 = vrcp.f32 %v1369_v6  ;;  %v1253_v24 = vsub.f32 %v3806_v46, %v1195_v2  ;;  %v1575_v19 = vsel %vm1572_vm13, %v1574_v41, %v1570_v63  ;;  %vm1584_vm2 = vmor %vm1582_vm15, %vm1583_vm14  ;;  %v1618_v33 = vand.u32 2147483648, %v1369_v6  ;;  %v1065_v13 = vpop.f32.mrf.mxu3 }
 0x301   :  { %v1579_v16 = vsub.f32 1.0, %v1578_v49  ;;  %v1576_v53 = vmul.f32 %v3783_v54, %v1575_v19  ;;  %v532_v54 = vadd.f32 %v531_v58, %v3671_v5  ;;  %v1616_v11 = vand.u32 2147483647, %v1369_v6 }
 0x302   :  { %v1303_v29 = vmul.f32 1.442695, %v1253_v24  ;;  %vm1612_vm5 = vweird.f32 %v1369_v6  ;;  %v1619_v12 = vor.u32 1.1754944e-38, %v1618_v33  ;;  %v3964_v41 = vmul.f32 0.35355338, %v1065_v13 }
 0x303   :  { %v1580_v42 = vmul.f32 %v2941_v20, %v1579_v16  ;;  %2807 = vmatmul.msk.f32.gmra.mxu0 %vm1138_vm1, %v1576_v53  ;;  %vm1617_vm7 = vcmp.eq.f32.partialorder %v1616_v11, 8.507059e+37  ;;  %v535_v63 = vadd.f32 %v3928_v8, %v3671_v5 }
 0x304   :  { %2944 = vpow2.f32 %v1303_v29 }
 0x305   :  { %v1581_v61 = vadd.f32 %v2941_v20, %v1580_v42  ;;  %v3980_v42 = vpop.f32.mrf.mxu2 }
 0x306   :  { %v2943_v4 = vpop.eup %2942 }
 0x307   :  { %v1585_v7 = vsel %vm1584_vm2, %v2941_v20, %v1581_v61  ;;  %v1608_v46 = vmul.f32 %v2943_v4, %v1369_v6  ;;  %v1198_v22 = vpop.xlane.xlu0 %1197  ;;  %v3935_v56 = vpop.xlane.xlu1 %1365  ;;  %vm1613_vm4 = vweird.f32 %v2943_v4  ;;  %v3962_v20 = vmul.f32 0.35355338, %v3926_v38 }
 0x308   :  { %v1590_v1 = vsel %vm1587_vm3, %v1589_v62, %v1585_v7  ;;  %v3938_v55 = vpop.xlane.xlu2 %1371  ;;  %v1254_v15 = vsub.f32 %v3823_v0, %v1198_v22  ;;  %2946 = vrcp.f32 %v3935_v56  ;;  %vm1614_vm6 = vmor %vm1612_vm5, %vm1613_vm4  ;;  %v1603_v24 = vand.u32 2147483648, %v3935_v56 }
 0x309   :  { %v1591_v57 = vmul.f32 %v3790_v34, %v1590_v1  ;;  %v1609_v52 = vsub.f32 1.0, %v1608_v46  ;;  %2948 = vrcp.f32 %v3938_v55  ;;  %v1601_v38 = vand.u32 2147483647, %v3935_v56 }
 0x30a   :  { %v1305_v51 = vmul.f32 1.442695, %v1254_v15  ;;  %v3945_v40 = vpop.eup %2944  ;;  %v1633_v53 = vand.u32 2147483648, %v3938_v55  ;;  %vm1597_vm9 = vweird.f32 %v3935_v56  ;;  %v1217_v29 = vsel %vm1138_vm1, %v3962_v20, -inf }
 0x30b   :  { %v1610_v23 = vmul.f32 %v2943_v4, %v1609_v52  ;;  %2808 = vmatmul.msk.f32.vlgmr.msrb.gmra.mxu1 %vm1138_vm1, %v1591_v57  ;;  %v1385_v34 = vsel %vm1138_vm1, %v3945_v40, 0.0  ;;  %v1604_v7 = vor.u32 1.1754944e-38, %v1603_v24  ;;  %v1223_v46 = vsel %vm1138_vm1, %v3964_v41, -inf }
 0x30c   :  { %2950 = vpow2.f32 %v1305_v51  ;;  %2304 = vmatpush.msrb.mxu1 %v532_v54  ;;  %1386 = vadd.xlane.f32.xlu1 %v1385_v34  ;;  %vm1627_vm12 = vweird.f32 %v3938_v55  ;;  %vm1602_vm13 = vcmp.eq.f32.partialorder %v1601_v38, 8.507059e+37  ;;  %v1634_v57 = vor.u32 1.1754944e-38, %v1633_v53  ;;  %v4031_v38 = vpop.f32.mrf.mxu3 }
 0x30d   :  { %v1611_v0 = vadd.f32 %v2943_v4, %v1610_v23 }
 0x30e   :  { %v2947_v37 = vpop.eup %2946  ;;  %2305 = vmatpush.msrb.mxu1 %v529_v39 }
 0x30f   :  { %v3950_v58 = vpop.eup %2948  ;;  %v1615_v48 = vsel %vm1614_vm6, %v2943_v4, %v1611_v0  ;;  %v1593_v9 = vmul.f32 %v2947_v37, %v3935_v56  ;;  %vm1598_vm8 = vweird.f32 %v2947_v37 }
 0x310   :  { %v3953_v43 = vpop.xlane.xlu0 %1374  ;;  %v1620_v17 = vsel %vm1617_vm7, %v1619_v12, %v1615_v48  ;;  %v1623_v18 = vmul.f32 %v3950_v58, %v3938_v55  ;;  %vm1628_vm10 = vweird.f32 %v3950_v58  ;;  %vm3988_vm11 = vmor %vm1597_vm9, %vm1598_vm8 }
 0x311   :  { %2952 = vrcp.f32 %v3953_v43  ;;  %v3959_v59 = vpop.xlane.xlu1 %1380  ;;  %v1621_v49 = vmul.f32 %v3812_v31, %v1620_v17  ;;  %v1594_v6 = vsub.f32 1.0, %v1593_v9  ;;  %v1631_v31 = vand.u32 2147483647, %v3938_v55  ;;  %vm1629_vm15 = vmor %vm1627_vm12, %vm1628_vm10 }
 0x312   :  { %v3967_v2 = vpop.eup %2950  ;;  %v1624_v16 = vsub.f32 1.0, %v1623_v18  ;;  %2954 = vrcp.f32 %v3959_v59  ;;  %v1646_v33 = vand.u32 2147483647, %v3953_v43  ;;  %v1648_v23 = vand.u32 2147483648, %v3953_v43 }
 0x313   :  { %v1595_v19 = vmul.f32 %v2947_v37, %v1594_v6  ;;  %2810 = vmatmul.msk.f32.vlgmr.msrb.gmra.mxu2 %vm1138_vm1, %v1621_v49  ;;  %v1388_v8 = vsel %vm1138_vm1, %v3967_v2, 0.0  ;;  %vm4000_vm14 = vcmp.eq.f32.partialorder %v1631_v31, 8.507059e+37  ;;  %vm1642_vm3 = vweird.f32 %v3953_v43 }
 0x314   :  { %v1625_v25 = vmul.f32 %v3950_v58, %v1624_v16  ;;  %2333 = vmatpush.msrb.mxu2 %v538_v30  ;;  %1389 = vadd.xlane.f32.xlu2 %v1388_v8  ;;  %v1676_v48 = vand.u32 2147483647, %v3959_v59  ;;  %v1678_v9 = vand.u32 2147483648, %v3959_v59  ;;  %v1649_v17 = vor.u32 1.1754944e-38, %v1648_v23 }
 0x315   :  { %v1596_v27 = vadd.f32 %v2947_v37, %v1595_v19  ;;  %1218 = vmax.xlane.f32.xlu1 %v1217_v29  ;;  %vm1672_vm6 = vweird.f32 %v3959_v59  ;;  %vm1647_vm7 = vcmp.eq.f32.partialorder %v1646_v33, 8.507059e+37  ;;  %v541_v8 = vadd.f32 %v3980_v42, %v3671_v5  ;;  %v2375_v42 = vld [vmem:[#allocation5 + $0x78] sm:$0xff] }
 0x316   :  { %v1626_v4 = vadd.f32 %v3950_v58, %v1625_v25  ;;  %2334 = vmatpush.msrb.mxu2 %v535_v63  ;;  %v1679_v24 = vor.u32 1.1754944e-38, %v1678_v9  ;;  %vm1677_vm9 = vcmp.eq.f32.partialorder %v1676_v48, 8.507059e+37 }
 0x317   :  { %v2953_v61 = vpop.eup %2952  ;;  %v3996_v56 = vpop.xlane.xlu2 %1383  ;;  %v1600_v54 = vsel %vm3988_vm11, %v2947_v37, %v1596_v27 }
 0x318   :  { %v1638_v22 = vmul.f32 %v2953_v61, %v3953_v43  ;;  %v2955_v1 = vpop.eup %2954  ;;  %2956 = vrcp.f32 %v3996_v56  ;;  %v1605_v39 = vsel %vm1602_vm13, %v1604_v7, %v1600_v54  ;;  %vm1643_vm2 = vweird.f32 %v2953_v61  ;;  %v543_v43 = vpop.f32.mrf.mxu2 }
 0x319   :  { %v1201_v52 = vpop.xlane.xlu1 %1200  ;;  %v1668_v51 = vmul.f32 %v2955_v1, %v3959_v59  ;;  %v1606_v11 = vmul.f32 %v3831_v47, %v1605_v39  ;;  %v1630_v0 = vsel %vm1629_vm15, %v3950_v58, %v1626_v4  ;;  %vm1673_vm4 = vweird.f32 %v2955_v1  ;;  %vm1644_vm5 = vmor %vm1642_vm3, %vm1643_vm2 }
 0x31a   :  { %v1639_v55 = vsub.f32 1.0, %v1638_v22  ;;  %v1255_v44 = vsub.f32 %v3869_v35, %v1201_v52  ;;  %v1635_v12 = vsel %vm4000_vm14, %v1634_v57, %v1630_v0  ;;  %v544_v63 = vadd.f32 %v543_v43, %v3671_v5  ;;  %vm1674_vm8 = vmor %vm1672_vm6, %vm1673_vm4 }
 0x31b   :  { %v1669_v37 = vsub.f32 1.0, %v1668_v51  ;;  %2809 = vmatmul.msk.f32.gmra.mxu1 %vm1138_vm1, %v1606_v11  ;;  %v1636_v35 = vmul.f32 %v3835_v3, %v1635_v12  ;;  %v1693_v29 = vand.u32 2147483648, %v3996_v56  ;;  %v1691_v62 = vand.u32 2147483647, %v3996_v56  ;;  %v2373_v51 = vld [vmem:[#allocation5 + $0x68] sm:$0xff]  ;;  %v4066_v12 = vpop.f32.mrf.mxu3 }
 0x31c   :  { %v1640_v34 = vmul.f32 %v2953_v61, %v1639_v55  ;;  %v1307_v13 = vmul.f32 1.442695, %v1255_v44  ;;  %vm1687_vm11 = vweird.f32 %v3996_v56 }
 0x31d   :  { %v1670_v47 = vmul.f32 %v2955_v1, %v1669_v37  ;;  %2811 = vmatmul.msk.f32.gmra.mxu2 %vm1138_vm1, %v1636_v35  ;;  %1224 = vmax.xlane.f32.xlu1 %v1223_v46  ;;  %v4047_v46 = vmul.f32 0.35355338, %v3932_v28  ;;  %vm1692_vm13 = vcmp.eq.f32.partialorder %v1691_v62, 8.507059e+37 }
 0x31e   :  { %v1641_v30 = vadd.f32 %v2953_v61, %v1640_v34  ;;  %2958 = vpow2.f32 %v1307_v13  ;;  %v2957_v58 = vpop.eup %2956  ;;  %v2372_v13 = vld [vmem:[#allocation5 + $0x60] sm:$0xff] }
 0x31f   :  { %v1671_v49 = vadd.f32 %v2955_v1, %v1670_v47  ;;  %v1683_v6 = vmul.f32 %v2957_v58, %v3996_v56  ;;  %v4024_v3 = vpop.xlane.xlu0 %1377  ;;  %vm1688_vm10 = vweird.f32 %v2957_v58  ;;  %v1220_v11 = vsel %vm1138_vm1, %v4047_v46, -inf }
 0x320   :  { %v1645_v18 = vsel %vm1644_vm5, %v2953_v61, %v1641_v30  ;;  %2960 = vrcp.f32 %v4024_v3  ;;  %v4029_v59 = vpop.xlane.xlu2 %1404  ;;  %vm1689_vm12 = vmor %vm1687_vm11, %vm1688_vm10  ;;  %v1661_v0 = vand.u32 2147483647, %v4024_v3  ;;  %v1663_v34 = vand.u32 2147483648, %v4024_v3 }
 0x321   :  { %v1650_v16 = vsel %vm1647_vm7, %v1649_v17, %v1645_v18  ;;  %v1204_v19 = vpop.xlane.xlu1 %1203  ;;  %v1675_v31 = vsel %vm1674_vm8, %v2955_v1, %v1671_v49  ;;  %v1684_v53 = vsub.f32 1.0, %v1683_v6  ;;  %2962 = vrcp.f32 %v4029_v59 }
 0x322   :  { %v1651_v25 = vmul.f32 %v3853_v21, %v1650_v16  ;;  %v1680_v27 = vsel %vm1677_vm9, %v1679_v24, %v1675_v31  ;;  %v1256_v21 = vsub.f32 %v3888_v10, %v1204_v19  ;;  %v1694_v1 = vor.u32 1.1754944e-38, %v1693_v29 }
 0x323   :  { %v1685_v4 = vmul.f32 %v2957_v58, %v1684_v53  ;;  %v1681_v7 = vmul.f32 %v3856_v50, %v1680_v27  ;;  %v2374_v50 = vld [vmem:[#allocation5 + $0x70] sm:$0xff]  ;;  %vm1657_vm15 = vweird.f32 %v4024_v3  ;;  %v1798_v30 = vand.u32 2147483648, %v4029_v59 }
 0x324   :  { %v4038_v61 = vpop.eup %2958  ;;  %2812 = vmatmul.msk.f32.vlgmr.msra.gmra.mxu3 %vm1138_vm1, %v1651_v25  ;;  %v1309_v15 = vmul.f32 1.442695, %v1256_v21  ;;  %v1796_v17 = vand.u32 2147483647, %v4029_v59  ;;  %vm1662_vm4 = vcmp.eq.f32.partialorder %v1661_v0, 8.507059e+37  ;;  %v1664_v18 = vor.u32 1.1754944e-38, %v1663_v34 }
 0x325   :  { %v1391_v5 = vsel %vm1138_vm1, %v4038_v61, 0.0  ;;  %2362 = vmatpush.msra.mxu3 %v544_v63  ;;  %v1686_v22 = vadd.f32 %v2957_v58, %v1685_v4  ;;  %2814 = vmatmul.msk.f32.vlgmr.msrb.gmra.mxu0 %vm1138_vm1, %v1681_v7  ;;  %vm1792_vm5 = vweird.f32 %v4029_v59  ;;  %v4091_v16 = vmul.f32 0.35355338, %v4031_v38 }
 0x326   :  { %1392 = vadd.xlane.f32.xlu0 %v1391_v5  ;;  %v4050_v54 = vpop.eup %2960  ;;  %2485 = vmatpush.msrb.mxu0 %v2375_v42  ;;  %2964 = vpow2.f32 %v1309_v15  ;;  %v1799_v24 = vor.u32 1.1754944e-38, %v1798_v30  ;;  %vm1797_vm7 = vcmp.eq.f32.partialorder %v1796_v17, 8.507059e+37  ;;  %v1103_v5 = vpop.f32.mrf.mxu3 }
 0x327   :  { %2363 = vmatpush.msra.mxu3 %v541_v8  ;;  %v1653_v10 = vmul.f32 %v4050_v54, %v4024_v3  ;;  %v1210_v57 = vpop.xlane.xlu0 %1209  ;;  %v1690_v28 = vsel %vm1689_vm12, %v2957_v58, %v1686_v22  ;;  %v2963_v56 = vpop.eup %2962  ;;  %vm1658_vm14 = vweird.f32 %v4050_v54 }
 0x328   :  { %v1258_v52 = vsub.f32 %v3907_v60, %v1210_v57  ;;  %v4057_v39 = vpop.xlane.xlu2 %1407  ;;  %v1695_v33 = vsel %vm1692_vm13, %v1694_v1, %v1690_v28  ;;  %v1788_v23 = vmul.f32 %v2963_v56, %v4029_v59  ;;  %2486 = vmatpush.msrb.mxu0 %v2374_v50  ;;  %vm1793_vm2 = vweird.f32 %v2963_v56  ;;  %vm4079_vm3 = vmor %vm1657_vm15, %vm1658_vm14 }
 0x329   :  { %v1207_v55 = vpop.xlane.xlu1 %1206  ;;  %v1654_v44 = vsub.f32 1.0, %v1653_v10  ;;  %2966 = vrcp.f32 %v4057_v39  ;;  %v1696_v35 = vmul.f32 %v3877_v45, %v1695_v33  ;;  %vm1794_vm6 = vmor %vm1792_vm5, %vm1793_vm2  ;;  %v1813_v29 = vand.u32 2147483648, %v4057_v39 }
 0x32a   :  { %v1313_v37 = vmul.f32 1.442695, %v1258_v52  ;;  %v1257_v60 = vsub.f32 %v3910_v14, %v1207_v55  ;;  %v1789_v9 = vsub.f32 1.0, %v1788_v23  ;;  %2487 = vmatpush.msrb.mxu0 %v2373_v51  ;;  %v1811_v7 = vand.u32 2147483647, %v4057_v39  ;;  %v1988_v55 = vpop.f32.mrf.mxu2 }
 0x32b   :  { %v1655_v48 = vmul.f32 %v4050_v54, %v1654_v44  ;;  %vm1807_vm9 = vweird.f32 %v4057_v39  ;;  %v1814_v22 = vor.u32 1.1754944e-38, %v1813_v29  ;;  %v4116_v10 = vmul.f32 0.35355338, %v4066_v12 }
 0x32c   :  { %2968 = vpow2.f32 %v1313_v37  ;;  %v1311_v47 = vmul.f32 1.442695, %v1257_v60  ;;  %v1790_v14 = vmul.f32 %v2963_v56, %v1789_v9  ;;  %2488 = vmatpush.msrb.mxu0 %v2372_v13  ;;  %v4075_v43 = vpop.eup %2964  ;;  %vm1812_vm11 = vcmp.eq.f32.partialorder %v1811_v7, 8.507059e+37 }
 0x32d   :  { %v1656_v58 = vadd.f32 %v4050_v54, %v1655_v48  ;;  %2815 = vmatmul.msk.f32.gmra.mxu0 %vm1138_vm1, %v1696_v35  ;;  %v1394_v3 = vsel %vm1138_vm1, %v4075_v43, 0.0  ;;  %v1229_v28 = vsel %vm1138_vm1, %v4116_v10, -inf }
 0x32e   :  { %1221 = vmax.xlane.f32.xlu0 %v1220_v11  ;;  %2970 = vpow2.f32 %v1311_v47  ;;  %v1791_v6 = vadd.f32 %v2963_v56, %v1790_v14  ;;  %1395 = vadd.xlane.f32.xlu2 %v1394_v3  ;;  %v2017_v51 = vpop.f32.mrf.mxu3 }
 0x32f   :  { %v2967_v49 = vpop.eup %2966  ;;  %v1660_v63 = vsel %vm4079_vm3, %v4050_v54, %v1656_v58  ;;  %v4112_v54 = vmul.f32 0.35355338, %v1103_v5 }
 0x330   :  { %v1803_v19 = vmul.f32 %v2967_v49, %v4057_v39  ;;  %v1665_v25 = vsel %vm1662_vm4, %v1664_v18, %v1660_v63  ;;  %v1795_v31 = vsel %vm1794_vm6, %v2963_v56, %v1791_v6  ;;  %vm1808_vm8 = vweird.f32 %v2967_v49  ;;  %v1930_v56 = vpop.f32.mrf.mxu0 }
 0x331   :  { %v1666_v59 = vmul.f32 %v3893_v36, %v1665_v25  ;;  %v1800_v8 = vsel %vm1797_vm7, %v1799_v24, %v1795_v31  ;;  %v1226_v36 = vsel %vm1138_vm1, %v4091_v16, -inf  ;;  %vm1809_vm10 = vmor %vm1807_vm9, %vm1808_vm8  ;;  %v1232_v57 = vsel %vm1138_vm1, %v4112_v54, -inf }
 0x332   :  { %v4096_v53 = vpop.eup %2968  ;;  %v1804_v27 = vsub.f32 1.0, %v1803_v19  ;;  %v1801_v38 = vmul.f32 %v3897_v26, %v1800_v8  ;;  %v1991_v33 = vpop.f32.mrf.mxu2 }
 0x333   :  { %2813 = vmatmul.msk.f32.gmra.mxu3 %vm1138_vm1, %v1666_v59  ;;  %v1400_v4 = vsel %vm1138_vm1, %v4096_v53, 0.0 }
 0x334   :  { %v4103_v62 = vpop.eup %2970  ;;  %v1805_v21 = vmul.f32 %v2967_v49, %v1804_v27  ;;  %1401 = vadd.xlane.f32.xlu1 %v1400_v4 }
 0x335   :  { %v1397_v42 = vsel %vm1138_vm1, %v4103_v62, 0.0  ;;  %2822 = vmatmul.msk.f32.vlgmr.msra.gmra.mxu0 %vm1138_vm1, %v1801_v38 }
 0x336   :  { %1227 = vmax.xlane.f32.xlu0 %v1226_v36  ;;  %v1806_v26 = vadd.f32 %v2967_v49, %v1805_v21  ;;  %1398 = vadd.xlane.f32.xlu2 %v1397_v42  ;;  %v2020_v44 = vpop.f32.mrf.mxu3 }
 0x338   :  { %v1810_v1 = vsel %vm1809_vm10, %v2967_v49, %v1806_v26  ;;  %v1933_v52 = vpop.f32.mrf.mxu0 }
 0x339   :  { %v1815_v15 = vsel %vm1812_vm11, %v1814_v22, %v1810_v1 }
 0x33a   :  { %v1816_v50 = vmul.f32 %v3915_v32, %v1815_v15  ;;  %v1959_v32 = vpop.f32.mrf.mxu1 }
 0x33d   :  { %2823 = vmatmul.msk.f32.gmra.mxu0 %vm1138_vm1, %v1816_v50 }
 0x33e   :  { %1233 = vmax.xlane.f32.xlu0 %v1232_v57  ;;  %1230 = vmax.xlane.f32.xlu2 %v1229_v28 }
 0x340   :  { %v2046_v11 = vpop.f32.mrf.mxu0 }
 0x342   :  { %v1962_v39 = vpop.f32.mrf.mxu1 }
 0x345   :  { %2830 = vmatmul.msk.f32.vlgmr.msrb.gmra.mxu0 %vm98_vm0, %v1930_v56 }
 0x34d   :  { %2831 = vmatmul.msk.f32.gmra.mxu0 %vm98_vm0, %v1933_v52 }
 0x355   :  { %2832 = vmatmul.msk.f32.gmra.mxu0 %vm98_vm0, %v1959_v32 }
 0x35d   :  { %2833 = vmatmul.msk.f32.gmra.mxu0 %vm98_vm0, %v1962_v39 }
 0x365   :  { %2834 = vmatmul.msk.f32.gmra.mxu0 %vm98_vm0, %v1988_v55 }
 0x36d   :  { %2835 = vmatmul.msk.f32.gmra.mxu0 %vm98_vm0, %v1991_v33 }
 0x375   :  { %2836 = vmatmul.msk.f32.gmra.mxu0 %vm98_vm0, %v2017_v51 }
 0x37d   :  { %2837 = vmatmul.msk.f32.gmra.mxu0 %vm98_vm0, %v2020_v44 }
 0x37f   :  { %v1387_v23 = vpop.xlane.xlu1 %1386 }
 0x380   :  { %2972 = vrcp.f32 %v1387_v23  ;;  %v1708_v48 = vand.u32 2147483648, %v1387_v23  ;;  %v1706_v30 = vand.u32 2147483647, %v1387_v23  ;;  %v2049_v47 = vpop.f32.mrf.mxu0  ;;  %vm1702_vm13 = vweird.f32 %v1387_v23 }
 0x382   :  { %v1709_v17 = vor.u32 1.1754944e-38, %v1708_v48  ;;  %vm1707_vm15 = vcmp.eq.f32.partialorder %v1706_v30, 8.507059e+37 }
 0x385   :  { %2838 = vmatmul.msk.f32.gmra.mxu0 %vm98_vm0, %v2046_v11 }
 0x386   :  { %v2973_v0 = vpop.eup %2972 }
 0x387   :  { %v1390_v34 = vpop.xlane.xlu2 %1389  ;;  %v1698_v37 = vmul.f32 %v2973_v0, %v1387_v23  ;;  %vm1703_vm12 = vweird.f32 %v2973_v0 }
 0x388   :  { %2974 = vrcp.f32 %v1390_v34  ;;  %v1219_v60 = vpop.xlane.xlu1 %1218  ;;  %vm1704_vm14 = vmor %vm1702_vm13, %vm1703_vm12  ;;  %v1723_v25 = vand.u32 2147483648, %v1390_v34  ;;  %v1721_v59 = vand.u32 2147483647, %v1390_v34  ;;  %v2075_v8 = vpop.f32.mrf.mxu1  ;;  %vm1717_vm3 = vweird.f32 %v1390_v34 }
 0x389   :  { %v1261_v13 = vsub.f32 %v3962_v20, %v1219_v60  ;;  %v1699_v12 = vsub.f32 1.0, %v1698_v37 }
 0x38a   :  { %vm1722_vm5 = vcmp.eq.f32.partialorder %v1721_v59, 8.507059e+37 }
 0x38b   :  { %v1319_v9 = vmul.f32 1.442695, %v1261_v13  ;;  %v1700_v35 = vmul.f32 %v2973_v0, %v1699_v12 }
 0x38d   :  { %2976 = vpow2.f32 %v1319_v9  ;;  %2839 = vmatmul.msk.f32.gmra.mxu0 %vm98_vm0, %v2049_v47  ;;  %v1701_v14 = vadd.f32 %v2973_v0, %v1700_v35 }
 0x38e   :  { %v2975_v58 = vpop.eup %2974 }
 0x38f   :  { %v1713_v45 = vmul.f32 %v2975_v58, %v1390_v34  ;;  %v1705_v18 = vsel %vm1704_vm14, %v2973_v0, %v1701_v14  ;;  %vm1718_vm2 = vweird.f32 %v2975_v58 }
 0x390   :  { %v1225_v49 = vpop.xlane.xlu1 %1224  ;;  %v1710_v20 = vsel %vm1707_vm15, %v1709_v17, %v1705_v18  ;;  %vm1719_vm4 = vmor %vm1717_vm3, %vm1718_vm2 }
 0x391   :  { %v1714_v6 = vsub.f32 1.0, %v1713_v45  ;;  %v1263_v3 = vsub.f32 %v3964_v41, %v1225_v49  ;;  %v1711_v63 = vmul.f32 %v3945_v40, %v1710_v20  ;;  %v1724_v40 = vor.u32 1.1754944e-38, %v1723_v25 }
 0x393   :  { %v4136_v24 = vpop.eup %2976  ;;  %v1715_v19 = vmul.f32 %v2975_v58, %v1714_v6  ;;  %v1323_v31 = vmul.f32 1.442695, %v1263_v3  ;;  %2816 = vmatmul.msk.f32.vlgmr.msra.gmra.mxu1 %vm1138_vm1, %v1711_v63 }
 0x394   :  { %v1409_v27 = vsel %vm1138_vm1, %v4136_v24, 0.0 }
 0x395   :  { %v1716_v29 = vadd.f32 %v2975_v58, %v1715_v19  ;;  %2978 = vpow2.f32 %v1323_v31  ;;  %2840 = vmatmul.msk.f32.gmra.mxu0 %vm98_vm0, %v2075_v8  ;;  %1410 = vadd.xlane.f32.xlu1 %v1409_v27 }
 0x396   :  { %v2104_v15 = vpop.f32.mrf.mxu2 }
 0x397   :  { %v1720_v38 = vsel %vm1719_vm4, %v2975_v58, %v1716_v29 }
 0x398   :  { %v1725_v4 = vsel %vm1722_vm5, %v1724_v40, %v1720_v38  ;;  %v2078_v7 = vpop.f32.mrf.mxu1 }
 0x399   :  { %v1393_v41 = vpop.xlane.xlu0 %1392  ;;  %v1726_v21 = vmul.f32 %v3967_v2, %v1725_v4 }
 0x39a   :  { %2980 = vrcp.f32 %v1393_v41  ;;  %v1738_v57 = vand.u32 2147483648, %v1393_v41  ;;  %v1736_v32 = vand.u32 2147483647, %v1393_v41  ;;  %vm1732_vm7 = vweird.f32 %v1393_v41 }
 0x39b   :  { %v4143_v36 = vpop.eup %2978  ;;  %2817 = vmatmul.msk.f32.gmra.mxu1 %vm1138_vm1, %v1726_v21 }
 0x39c   :  { %v1415_v5 = vsel %vm1138_vm1, %v4143_v36, 0.0  ;;  %v1739_v55 = vor.u32 1.1754944e-38, %v1738_v57  ;;  %vm1737_vm9 = vcmp.eq.f32.partialorder %v1736_v32, 8.507059e+37 }
 0x39d   :  { %2841 = vmatmul.msk.f32.gmra.mxu0 %vm98_vm0, %v2078_v7  ;;  %1416 = vadd.xlane.f32.xlu0 %v1415_v5 }
 0x3a0   :  { %v2981_v42 = vpop.eup %2980  ;;  %v2107_v48 = vpop.f32.mrf.mxu2 }
 0x3a1   :  { %v1728_v26 = vmul.f32 %v2981_v42, %v1393_v41  ;;  %v1222_v22 = vpop.xlane.xlu0 %1221  ;;  %v1396_v2 = vpop.xlane.xlu2 %1395  ;;  %vm1733_vm6 = vweird.f32 %v2981_v42 }
 0x3a2   :  { %v1262_v1 = vsub.f32 %v4047_v46, %v1222_v22  ;;  %v4150_v56 = vpop.f32.mrf.mxu0  ;;  %2982 = vrcp.f32 %v1396_v2  ;;  %vm1734_vm8 = vmor %vm1732_vm7, %vm1733_vm6  ;;  %v1753_v30 = vand.u32 2147483648, %v1396_v2  ;;  %v1751_v58 = vand.u32 2147483647, %v1396_v2 }
 0x3a3   :  { %v1729_v50 = vsub.f32 1.0, %v1728_v26  ;;  %vm1747_vm11 = vweird.f32 %v1396_v2 }
 0x3a4   :  { %v1321_v28 = vmul.f32 1.442695, %v1262_v1  ;;  %v1754_v20 = vor.u32 1.1754944e-38, %v1753_v30  ;;  %vm1752_vm13 = vcmp.eq.f32.partialorder %v1751_v58, 8.507059e+37 }
 0x3a5   :  { %v1730_v52 = vmul.f32 %v2981_v42, %v1729_v50  ;;  %2842 = vmatmul.msk.f32.gmra.mxu0 %vm98_vm0, %v2104_v15 }
 0x3a6   :  { %2984 = vpow2.f32 %v1321_v28 }
 0x3a7   :  { %v1731_v39 = vadd.f32 %v2981_v42, %v1730_v52  ;;  %v4153_v33 = vpop.xlane.xlu1 %1401 }
 0x3a8   :  { %2986 = vrcp.f32 %v4153_v33  ;;  %v2983_v11 = vpop.eup %2982  ;;  %v1783_v15 = vand.u32 2147483648, %v4153_v33  ;;  %vm1777_vm5 = vweird.f32 %v4153_v33 }
 0x3a9   :  { %v1735_v46 = vsel %vm1734_vm8, %v2981_v42, %v1731_v39  ;;  %v1228_v51 = vpop.xlane.xlu0 %1227  ;;  %v1743_v37 = vmul.f32 %v2983_v11, %v1396_v2  ;;  %v1399_v60 = vpop.xlane.xlu2 %1398  ;;  %vm1748_vm10 = vweird.f32 %v2983_v11  ;;  %v1781_v2 = vand.u32 2147483647, %v4153_v33 }
 0x3aa   :  { %v1740_v44 = vsel %vm1737_vm9, %v1739_v55, %v1735_v46  ;;  %v1264_v23 = vsub.f32 %v4091_v16, %v1228_v51  ;;  %v4160_v12 = vpop.f32.mrf.mxu0  ;;  %2988 = vrcp.f32 %v1399_v60  ;;  %vm1749_vm12 = vmor %vm1747_vm11, %vm1748_vm10  ;;  %v1768_v40 = vand.u32 2147483648, %v1399_v60 }
 0x3ab   :  { %v1741_v0 = vmul.f32 %v4038_v61, %v1740_v44  ;;  %v1744_v9 = vsub.f32 1.0, %v1743_v37  ;;  %v1766_v21 = vand.u32 2147483647, %v1399_v60  ;;  %vm1762_vm15 = vweird.f32 %v1399_v60 }
 0x3ac   :  { %v4158_v34 = vpop.eup %2984  ;;  %v1325_v13 = vmul.f32 1.442695, %v1264_v23  ;;  %v1769_v5 = vor.u32 1.1754944e-38, %v1768_v40  ;;  %v1784_v55 = vor.u32 1.1754944e-38, %v1783_v15  ;;  %vm1782_vm7 = vcmp.eq.f32.partialorder %v1781_v2, 8.507059e+37 }
 0x3ad   :  { %2818 = vmatmul.msk.f32.vlgmr.msra.gmra.mxu2 %vm1138_vm1, %v1741_v0  ;;  %v1412_v35 = vsel %vm1138_vm1, %v4158_v34, 0.0  ;;  %2843 = vmatmul.msk.f32.gmra.mxu0 %vm98_vm0, %v2107_v48  ;;  %v1745_v61 = vmul.f32 %v2983_v11, %v1744_v9  ;;  %vm1767_vm3 = vcmp.eq.f32.partialorder %v1766_v21, 8.507059e+37 }
 0x3ae   :  { %2990 = vpow2.f32 %v1325_v13  ;;  %v4165_v16 = vpop.eup %2986  ;;  %1413 = vadd.xlane.f32.xlu2 %v1412_v35 }
 0x3af   :  { %v1773_v47 = vmul.f32 %v4165_v16, %v4153_v33  ;;  %v1746_v17 = vadd.f32 %v2983_v11, %v1745_v61  ;;  %vm1778_vm4 = vweird.f32 %v4165_v16 }
 0x3b0   :  { %v2989_v18 = vpop.eup %2988  ;;  %vm1779_vm6 = vmor %vm1777_vm5, %vm1778_vm4 }
 0x3b1   :  { %v1234_v14 = vpop.xlane.xlu0 %1233  ;;  %v1758_v6 = vmul.f32 %v2989_v18, %v1399_v60  ;;  %v1774_v3 = vsub.f32 1.0, %v1773_v47  ;;  %v1231_v63 = vpop.xlane.xlu2 %1230  ;;  %v1750_v59 = vsel %vm1749_vm12, %v2983_v11, %v1746_v17  ;;  %vm1763_vm14 = vweird.f32 %v2989_v18 }
 0x3b2   :  { %v1266_v45 = vsub.f32 %v4112_v54, %v1234_v14  ;;  %v4173_v25 = vpop.f32.mrf.mxu0  ;;  %v1265_v31 = vsub.f32 %v4116_v10, %v1231_v63  ;;  %v2133_v54 = vpop.f32.mrf.mxu3  ;;  %v1755_v29 = vsel %vm1752_vm13, %v1754_v20, %v1750_v59  ;;  %vm1764_vm2 = vmor %vm1762_vm15, %vm1763_vm14 }
 0x3b3   :  { %v1759_v27 = vsub.f32 1.0, %v1758_v6  ;;  %v1756_v38 = vmul.f32 %v4075_v43, %v1755_v29  ;;  %v1775_v10 = vmul.f32 %v4165_v16, %v1774_v3 }
 0x3b4   :  { %v4171_v49 = vpop.eup %2990  ;;  %v1329_v19 = vmul.f32 1.442695, %v1266_v45  ;;  %v1327_v41 = vmul.f32 1.442695, %v1265_v31 }
 0x3b5   :  { %v1418_v8 = vsel %vm1138_vm1, %v4171_v49, 0.0  ;;  %2844 = vmatmul.msk.f32.gmra.mxu0 %vm98_vm0, %v2133_v54  ;;  %v1760_v4 = vmul.f32 %v2989_v18, %v1759_v27  ;;  %2819 = vmatmul.msk.f32.gmra.mxu2 %vm1138_vm1, %v1756_v38  ;;  %v1776_v43 = vadd.f32 %v4165_v16, %v1775_v10 }
 0x3b6   :  { %2992 = vpow2.f32 %v1329_v19  ;;  %1419 = vadd.xlane.f32.xlu1 %v1418_v8 }
 0x3b7   :  { %2994 = vpow2.f32 %v1327_v41  ;;  %v1761_v7 = vadd.f32 %v2989_v18, %v1760_v4  ;;  %v1780_v39 = vsel %vm1779_vm6, %v4165_v16, %v1776_v43 }
 0x3b8   :  { %v1785_v33 = vsel %vm1782_vm7, %v1784_v55, %v1780_v39 }
 0x3b9   :  { %v1765_v26 = vsel %vm1764_vm2, %v2989_v18, %v1761_v7  ;;  %v1786_v23 = vmul.f32 %v4096_v53, %v1785_v33 }
 0x3ba   :  { %v4186_v22 = vpop.f32.mrf.mxu0  ;;  %v1770_v1 = vsel %vm1767_vm3, %v1769_v5, %v1765_v26  ;;  %v2136_v28 = vpop.f32.mrf.mxu3 }
 0x3bb   :  { %v1771_v57 = vmul.f32 %v4103_v62, %v1770_v1  ;;  %v3008_v62 = vld [vmem:[#allocation7] sm:$0xf] }
 0x3bc   :  { %v4182_v42 = vpop.eup %2992  ;;  %v4201_v46 = vperm.slane %v3008_v62, 3 }
 0x3bd   :  { %v1424_v50 = vsel %vm1138_vm1, %v4182_v42, 0.0  ;;  %v4194_v52 = vpop.eup %2994  ;;  %2845 = vmatmul.msk.f32.gmra.mxu0 %vm98_vm0, %v2136_v28  ;;  %2820 = vmatmul.msk.f32.vlgmr.msrb.gmra.mxu3 %vm1138_vm1, %v1771_v57 }
 0x3be   :  { %1425 = vadd.xlane.f32.xlu0 %v1424_v50  ;;  %v1421_v32 = vsel %vm1138_vm1, %v4194_v52, 0.0 }
 0x3bf   :  { %1422 = vadd.xlane.f32.xlu2 %v1421_v32 }
 0x3c2   :  { %v2490_v51 = vpop.f32.mrf.mxu0 }
 0x3c3   :  { %v2491_v44 = vadd.f32 %v2490_v51, %v4201_v46 }
 0x3c5   :  { %2586 = vst.msk [vmem:[#allocation8] sm:$0xff] %vm98_vm0, %v2491_v44  ;;  %2846 = vmatmul.msk.f32.gmra.mxu0 %vm98_vm0, %v4150_v56  ;;  %2821 = vmatmul.msk.f32.gmra.mxu3 %vm1138_vm1, %v1786_v23 }
 0x3ca   :  { %v2493_v11 = vpop.f32.mrf.mxu0 }
 0x3cb   :  { %v2494_v0 = vadd.f32 %v2493_v11, %v4201_v46 }
 0x3cd   :  { %2587 = vst.msk [vmem:[#allocation8 + $0x8] sm:$0xff] %vm98_vm0, %v2494_v0  ;;  %2847 = vmatmul.msk.f32.gmra.mxu0 %vm98_vm0, %v4160_v12 }
 0x3d2   :  { %v2496_v37 = vpop.f32.mrf.mxu0 }
 0x3d3   :  { %v2497_v60 = vadd.f32 %v2496_v37, %v4201_v46 }
 0x3d5   :  { %2588 = vst.msk [vmem:[#allocation8 + $0x10] sm:$0xff] %vm98_vm0, %v2497_v60 }
 0x3da   :  { %v2499_v53 = vpop.f32.mrf.mxu0 }
 0x3db   :  { %v2500_v13 = vadd.f32 %v2499_v53, %v4201_v46 }
 0x3dd   :  { %2589 = vst.msk [vmem:[#allocation8 + $0x18] sm:$0xff] %vm98_vm0, %v2500_v13 }
 0x3e2   :  { %v2502_v56 = vpop.f32.mrf.mxu0 }
 0x3e3   :  { %v2503_v48 = vadd.f32 %v2502_v56, %v4201_v46 }
 0x3e5   :  { %2590 = vst.msk [vmem:[#allocation8 + $0x20] sm:$0xff] %vm98_vm0, %v2503_v48 }
 0x3ea   :  { %v2505_v9 = vpop.f32.mrf.mxu0 }
 0x3eb   :  { %v2506_v35 = vadd.f32 %v2505_v9, %v4201_v46 }
 0x3ed   :  { %2591 = vst.msk [vmem:[#allocation8 + $0x28] sm:$0xff] %vm98_vm0, %v2506_v35 }
 0x3f2   :  { %v2508_v12 = vpop.f32.mrf.mxu0 }
 0x3f3   :  { %v2509_v16 = vadd.f32 %v2508_v12, %v4201_v46 }
 0x3f5   :  { %2592 = vst.msk [vmem:[#allocation8 + $0x30] sm:$0xff] %vm98_vm0, %v2509_v16 }
 0x3fa   :  { %v2511_v61 = vpop.f32.mrf.mxu0 }
 0x3fb   :  { %v2512_v30 = vadd.f32 %v2511_v61, %v4201_v46 }
 0x3fd   :  { %2593 = vst.msk [vmem:[#allocation8 + $0x38] sm:$0xff] %vm98_vm0, %v2512_v30 }
 0x402   :  { %v2514_v47 = vpop.f32.mrf.mxu0 }
 0x403   :  { %v2515_v58 = vadd.f32 %v2514_v47, %v4201_v46 }
 0x405   :  { %2594 = vst.msk [vmem:[#allocation8 + $0x40] sm:$0xff] %vm98_vm0, %v2515_v58 }
 0x408   :  { %v1411_v14 = vpop.xlane.xlu1 %1410 }
 0x409   :  { %2996 = vrcp.f32 %v1411_v14  ;;  %v1828_v31 = vand.u32 2147483648, %v1411_v14  ;;  %v1826_v54 = vand.u32 2147483647, %v1411_v14  ;;  %vm1822_vm9 = vweird.f32 %v1411_v14 }
 0x40a   :  { %v2517_v17 = vpop.f32.mrf.mxu0 }
 0x40b   :  { %v2518_v45 = vadd.f32 %v2517_v17, %v4201_v46  ;;  %v1829_v40 = vor.u32 1.1754944e-38, %v1828_v31  ;;  %vm1827_vm11 = vcmp.eq.f32.partialorder %v1826_v54, 8.507059e+37 }
 0x40d   :  { %2595 = vst.msk [vmem:[#allocation8 + $0x48] sm:$0xff] %vm98_vm0, %v2518_v45 }
 0x40f   :  { %v2997_v18 = vpop.eup %2996 }
 0x410   :  { %v1818_v20 = vmul.f32 %v2997_v18, %v1411_v14  ;;  %v1417_v6 = vpop.xlane.xlu0 %1416  ;;  %v2191_v3 = vpop.f32.mrf.mxu1  ;;  %vm1823_vm8 = vweird.f32 %v2997_v18 }
 0x411   :  { %2998 = vrcp.f32 %v1417_v6  ;;  %2848 = vmatmul.msk.f32.gmra.mxu0 %vm98_vm0, %v2191_v3  ;;  %vm1824_vm10 = vmor %vm1822_vm9, %vm1823_vm8  ;;  %v1858_v26 = vand.u32 2147483648, %v1417_v6  ;;  %v1856_v15 = vand.u32 2147483647, %v1417_v6  ;;  %vm1852_vm13 = vweird.f32 %v1417_v6 }
 0x412   :  { %v1819_v63 = vsub.f32 1.0, %v1818_v20  ;;  %v2520_v19 = vpop.f32.mrf.mxu0 }
 0x413   :  { %v2521_v59 = vadd.f32 %v2520_v19, %v4201_v46  ;;  %v1859_v57 = vor.u32 1.1754944e-38, %v1858_v26  ;;  %vm1857_vm15 = vcmp.eq.f32.partialorder %v1856_v15, 8.507059e+37 }
 0x414   :  { %v1820_v8 = vmul.f32 %v2997_v18, %v1819_v63 }
 0x415   :  { %2596 = vst.msk [vmem:[#allocation8 + $0x50] sm:$0xff] %vm98_vm0, %v2521_v59 }
 0x416   :  { %v1821_v27 = vadd.f32 %v2997_v18, %v1820_v8 }
 0x417   :  { %v2999_v29 = vpop.eup %2998 }
 0x418   :  { %v1825_v41 = vsel %vm1824_vm10, %v2997_v18, %v1821_v27  ;;  %v1848_v38 = vmul.f32 %v2999_v29, %v1417_v6  ;;  %v2194_v21 = vpop.f32.mrf.mxu1  ;;  %vm1853_vm12 = vweird.f32 %v2999_v29 }
 0x419   :  { %v1830_v4 = vsel %vm1827_vm11, %v1829_v40, %v1825_v41  ;;  %2849 = vmatmul.msk.f32.gmra.mxu0 %vm98_vm0, %v2194_v21  ;;  %vm1854_vm14 = vmor %vm1852_vm13, %vm1853_vm12 }
 0x41a   :  { %v1831_v10 = vmul.f32 %v4136_v24, %v1830_v4  ;;  %v1849_v7 = vsub.f32 1.0, %v1848_v38  ;;  %v2523_v5 = vpop.f32.mrf.mxu0 }
 0x41b   :  { %v2524_v43 = vadd.f32 %v2523_v5, %v4201_v46 }
 0x41c   :  { %v1850_v1 = vmul.f32 %v2999_v29, %v1849_v7  ;;  %2824 = vmatmul.msk.f32.vlgmr.msrb.gmra.mxu1 %vm1138_vm1, %v1831_v10 }
 0x41d   :  { %2597 = vst.msk [vmem:[#allocation8 + $0x58] sm:$0xff] %vm98_vm0, %v2524_v43 }
 0x41e   :  { %v1851_v50 = vadd.f32 %v2999_v29, %v1850_v1 }
 0x420   :  { %v1855_v2 = vsel %vm1854_vm14, %v2999_v29, %v1851_v50 }
 0x421   :  { %v1414_v24 = vpop.xlane.xlu2 %1413  ;;  %v1860_v28 = vsel %vm1857_vm15, %v1859_v57, %v1855_v2 }
 0x422   :  { %3000 = vrcp.f32 %v1414_v24  ;;  %v1861_v32 = vmul.f32 %v4143_v36, %v1860_v28  ;;  %v2526_v39 = vpop.f32.mrf.mxu0  ;;  %v1843_v37 = vand.u32 2147483648, %v1414_v24  ;;  %v1841_v60 = vand.u32 2147483647, %v1414_v24 }
 0x423   :  { %v2527_v55 = vadd.f32 %v2526_v39, %v4201_v46  ;;  %vm1837_vm3 = vweird.f32 %v1414_v24 }
 0x424   :  { %2826 = vmatmul.msk.f32.vlgmr.msrb.gmra.mxu2 %vm1138_vm1, %v1861_v32  ;;  %v1844_v9 = vor.u32 1.1754944e-38, %v1843_v37  ;;  %vm1842_vm5 = vcmp.eq.f32.partialorder %v1841_v60, 8.507059e+37 }
 0x425   :  { %2598 = vst.msk [vmem:[#allocation8 + $0x60] sm:$0xff] %vm98_vm0, %v2527_v55 }
 0x428   :  { %v3001_v62 = vpop.eup %3000 }
 0x429   :  { %v1420_v33 = vpop.xlane.xlu1 %1419  ;;  %v1833_v51 = vmul.f32 %v3001_v62, %v1414_v24  ;;  %vm1838_vm2 = vweird.f32 %v3001_v62 }
 0x42a   :  { %3002 = vrcp.f32 %v1420_v33  ;;  %v2529_v23 = vpop.f32.mrf.mxu0  ;;  %vm1839_vm4 = vmor %vm1837_vm3, %vm1838_vm2  ;;  %v1873_v16 = vand.u32 2147483648, %v1420_v33  ;;  %v1871_v14 = vand.u32 2147483647, %v1420_v33  ;;  %vm1867_vm7 = vweird.f32 %v1420_v33 }
 0x42b   :  { %v1834_v44 = vsub.f32 1.0, %v1833_v51  ;;  %v2530_v11 = vadd.f32 %v2529_v23, %v4201_v46 }
 0x42c   :  { %v1874_v6 = vor.u32 1.1754944e-38, %v1873_v16  ;;  %vm1872_vm9 = vcmp.eq.f32.partialorder %v1871_v14, 8.507059e+37 }
 0x42d   :  { %v1835_v0 = vmul.f32 %v3001_v62, %v1834_v44  ;;  %2599 = vst.msk [vmem:[#allocation8 + $0x68] sm:$0xff] %vm98_vm0, %v2530_v11 }
 0x42f   :  { %v1836_v53 = vadd.f32 %v3001_v62, %v1835_v0 }
 0x430   :  { %v3003_v36 = vpop.eup %3002  ;;  %v2220_v13 = vpop.f32.mrf.mxu2 }
 0x431   :  { %v1863_v56 = vmul.f32 %v3003_v36, %v1420_v33  ;;  %2850 = vmatmul.msk.f32.gmra.mxu0 %vm98_vm0, %v2220_v13  ;;  %v4244_v48 = vpop.xlane.xlu0 %1425  ;;  %v1840_v12 = vsel %vm1839_vm4, %v3001_v62, %v1836_v53  ;;  %vm1868_vm6 = vweird.f32 %v3003_v36 }
 0x432   :  { %3004 = vrcp.f32 %v4244_v48  ;;  %v1423_v61 = vpop.xlane.xlu2 %1422  ;;  %v2532_v30 = vpop.f32.mrf.mxu0  ;;  %v1845_v47 = vsel %vm1842_vm5, %v1844_v9, %v1840_v12  ;;  %vm1869_vm8 = vmor %vm1867_vm7, %vm1868_vm6  ;;  %v1903_v15 = vand.u32 2147483648, %v4244_v48  ;;  %vm1897_vm15 = vweird.f32 %v4244_v48 }
 0x433   :  { %v1864_v35 = vsub.f32 1.0, %v1863_v56  ;;  %3006 = vrcp.f32 %v1423_v61  ;;  %v2533_v17 = vadd.f32 %v2532_v30, %v4201_v46  ;;  %v1846_v45 = vmul.f32 %v4158_v34, %v1845_v47 }
 0x434   :  { %v1888_v41 = vand.u32 2147483648, %v1423_v61  ;;  %v1886_v4 = vand.u32 2147483647, %v1423_v61  ;;  %vm1882_vm11 = vweird.f32 %v1423_v61  ;;  %v1901_v2 = vand.u32 2147483647, %v4244_v48 }
 0x435   :  { %v1865_v58 = vmul.f32 %v3003_v36, %v1864_v35  ;;  %2600 = vst.msk [vmem:[#allocation8 + $0x70] sm:$0xff] %vm98_vm0, %v2533_v17  ;;  %2825 = vmatmul.msk.f32.gmra.mxu1 %vm1138_vm1, %v1846_v45  ;;  %v1904_v28 = vor.u32 1.1754944e-38, %v1903_v15 }
 0x436   :  { %vm1887_vm13 = vcmp.eq.f32.partialorder %v1886_v4, 8.507059e+37  ;;  %vm1902_vm3 = vcmp.eq.f32.partialorder %v1901_v2, 8.507059e+37 }
 0x437   :  { %v1866_v18 = vadd.f32 %v3003_v36, %v1865_v58 }
 0x438   :  { %v3005_v20 = vpop.eup %3004  ;;  %v2223_v34 = vpop.f32.mrf.mxu2 }
 0x439   :  { %v1870_v3 = vsel %vm1869_vm8, %v3003_v36, %v1866_v18  ;;  %v1893_v63 = vmul.f32 %v3005_v20, %v4244_v48  ;;  %v3007_v31 = vpop.eup %3006  ;;  %2851 = vmatmul.msk.f32.gmra.mxu0 %vm98_vm0, %v2223_v34  ;;  %vm1898_vm14 = vweird.f32 %v3005_v20 }
 0x43a   :  { %v1875_v19 = vsel %vm1872_vm9, %v1874_v6, %v1870_v3  ;;  %v1878_v8 = vmul.f32 %v3007_v31, %v1423_v61  ;;  %v2535_v27 = vpop.f32.mrf.mxu0  ;;  %vm1883_vm10 = vweird.f32 %v3007_v31  ;;  %vm1899_vm2 = vmor %vm1897_vm15, %vm1898_vm14 }
 0x43b   :  { %v1876_v59 = vmul.f32 %v4171_v49, %v1875_v19  ;;  %v1894_v54 = vsub.f32 1.0, %v1893_v63  ;;  %v2536_v29 = vadd.f32 %v2535_v27, %v4201_v46  ;;  %vm1884_vm12 = vmor %vm1882_vm11, %vm1883_vm10  ;;  %v1889_v49 = vor.u32 1.1754944e-38, %v1888_v41 }
 0x43c   :  { %v1879_v40 = vsub.f32 1.0, %v1878_v8 }
 0x43d   :  { %2827 = vmatmul.msk.f32.gmra.mxu2 %vm1138_vm1, %v1876_v59  ;;  %2601 = vst.msk [vmem:[#allocation8 + $0x78] sm:$0xff] %vm98_vm0, %v2536_v29  ;;  %v1895_v21 = vmul.f32 %v3005_v20, %v1894_v54 }
 0x43e   :  { %v1880_v38 = vmul.f32 %v3007_v31, %v1879_v40 }
 0x43f   :  { %v1896_v26 = vadd.f32 %v3005_v20, %v1895_v21 }
 0x440   :  { %v1881_v10 = vadd.f32 %v3007_v31, %v1880_v38  ;;  %v2249_v7 = vpop.f32.mrf.mxu3 }
 0x441   :  { %2852 = vmatmul.msk.f32.gmra.mxu0 %vm98_vm0, %v2249_v7  ;;  %v1900_v24 = vsel %vm1899_vm2, %v3005_v20, %v1896_v26 }
 0x442   :  { %v1885_v5 = vsel %vm1884_vm12, %v3007_v31, %v1881_v10  ;;  %v2538_v43 = vpop.f32.mrf.mxu0  ;;  %v1905_v39 = vsel %vm1902_vm3, %v1904_v28, %v1900_v24 }
 0x443   :  { %v1890_v1 = vsel %vm1887_vm13, %v1889_v49, %v1885_v5  ;;  %v2539_v50 = vadd.f32 %v2538_v43, %v4201_v46 }
 0x444   :  { %v1891_v57 = vmul.f32 %v4194_v52, %v1890_v1  ;;  %v1906_v52 = vmul.f32 %v4182_v42, %v1905_v39 }
 0x445   :  { %2602 = vst.msk [vmem:[#allocation8 + $0x80] sm:$0xff] %vm98_vm0, %v2539_v50 }
 0x446   :  { %2828 = vmatmul.msk.f32.vlgmr.msra.gmra.mxu3 %vm1138_vm1, %v1891_v57 }
 0x448   :  { %v2252_v32 = vpop.f32.mrf.mxu3 }
 0x449   :  { %2853 = vmatmul.msk.f32.gmra.mxu0 %vm98_vm0, %v2252_v32 }
 0x44a   :  { %v2541_v55 = vpop.f32.mrf.mxu0 }
 0x44b   :  { %v2542_v62 = vadd.f32 %v2541_v55, %v4201_v46 }
 0x44d   :  { %2603 = vst.msk [vmem:[#allocation8 + $0x88] sm:$0xff] %vm98_vm0, %v2542_v62 }
 0x44e   :  { %2829 = vmatmul.msk.f32.gmra.mxu3 %vm1138_vm1, %v1906_v52 }
 0x451   :  { %2854 = vmatmul.msk.f32.gmra.mxu0 %vm98_vm0, %v4173_v25 }
 0x459   :  { %2855 = vmatmul.msk.f32.gmra.mxu0 %vm98_vm0, %v4186_v22 }
 0x48e   :  { %v2544_v33 = vpop.f32.mrf.mxu0 }
 0x48f   :  { %v2545_v51 = vadd.f32 %v2544_v33, %v4201_v46 }
 0x491   :  { %2604 = vst.msk [vmem:[#allocation8 + $0x90] sm:$0xff] %vm98_vm0, %v2545_v51 }
 0x496   :  { %v2547_v44 = vpop.f32.mrf.mxu0 }
 0x497   :  { %v2548_v23 = vadd.f32 %v2547_v44, %v4201_v46 }
 0x499   :  { %v2307_v11 = vpop.f32.mrf.mxu1  ;;  %2605 = vst.msk [vmem:[#allocation8 + $0x98] sm:$0xff] %vm98_vm0, %v2548_v23 }
 0x49a   :  { %2856 = vmatmul.msk.f32.gmra.mxu0 %vm98_vm0, %v2307_v11 }
 0x4a7   :  { %v2336_v60 = vpop.f32.mrf.mxu2 }
 0x4ae   :  { %v2550_v42 = vpop.f32.mrf.mxu0 }
 0x4af   :  { %v2551_v0 = vadd.f32 %v2550_v42, %v4201_v46 }
 0x4b1   :  { %2606 = vst.msk [vmem:[#allocation8 + $0xa0] sm:$0xff] %vm98_vm0, %v2551_v0 }
 0x4b2   :  { %v2310_v25 = vpop.f32.mrf.mxu1 }
 0x4b3   :  { %2857 = vmatmul.msk.f32.gmra.mxu0 %vm98_vm0, %v2310_v25 }
 0x4b6   :  { %v2553_v22 = vpop.f32.mrf.mxu0 }
 0x4b7   :  { %v2554_v37 = vadd.f32 %v2553_v22, %v4201_v46 }
 0x4b9   :  { %2607 = vst.msk [vmem:[#allocation8 + $0xa8] sm:$0xff] %vm98_vm0, %v2554_v37 }
 0x4bb   :  { %2858 = vmatmul.msk.f32.gmra.mxu0 %vm98_vm0, %v2336_v60 }
 0x4be   :  { %v2556_v36 = vpop.f32.mrf.mxu0 }
 0x4bf   :  { %v2557_v53 = vadd.f32 %v2556_v36, %v4201_v46 }
 0x4c0   :  { %v2339_v13 = vpop.f32.mrf.mxu2 }
 0x4c1   :  { %2608 = vst.msk [vmem:[#allocation8 + $0xb0] sm:$0xff] %vm98_vm0, %v2557_v53 }
 0x4c3   :  { %2859 = vmatmul.msk.f32.gmra.mxu0 %vm98_vm0, %v2339_v13 }
 0x4c6   :  { %v2559_v56 = vpop.f32.mrf.mxu0 }
 0x4c7   :  { %v2560_v48 = vadd.f32 %v2559_v56, %v4201_v46 }
 0x4c9   :  { %v2365_v9 = vpop.f32.mrf.mxu3  ;;  %2609 = vst.msk [vmem:[#allocation8 + $0xb8] sm:$0xff] %vm98_vm0, %v2560_v48 }
 0x4cb   :  { %2860 = vmatmul.msk.f32.gmra.mxu0 %vm98_vm0, %v2365_v9 }
 0x4ce   :  { %v2562_v35 = vpop.f32.mrf.mxu0 }
 0x4cf   :  { %v2563_v12 = vadd.f32 %v2562_v35, %v4201_v46 }
 0x4d1   :  { %2610 = vst.msk [vmem:[#allocation8 + $0xc0] sm:$0xff] %vm98_vm0, %v2563_v12  ;;  %v2368_v16 = vpop.f32.mrf.mxu3 }
 0x4d3   :  { %2861 = vmatmul.msk.f32.gmra.mxu0 %vm98_vm0, %v2368_v16 }
 0x4d6   :  { %v2565_v61 = vpop.f32.mrf.mxu0 }
 0x4d7   :  { %v2566_v30 = vadd.f32 %v2565_v61, %v4201_v46 }
 0x4d9   :  { %2611 = vst.msk [vmem:[#allocation8 + $0xc8] sm:$0xff] %vm98_vm0, %v2566_v30 }
 0x517   :  { %v2568_v47 = vpop.f32.mrf.mxu0 }
 0x518   :  { %v2569_v58 = vadd.f32 %v2568_v47, %v4201_v46 }
 0x51a   :  { %2612 = vst.msk [vmem:[#allocation8 + $0xd0] sm:$0xff] %vm98_vm0, %v2569_v58 }
 0x530   :  { %v2571_v14 = vpop.f32.mrf.mxu0 }
 0x531   :  { %v2572_v17 = vadd.f32 %v2571_v14, %v4201_v46 }
 0x533   :  { %2613 = vst.msk [vmem:[#allocation8 + $0xd8] sm:$0xff] %vm98_vm0, %v2572_v17 }
 0x538   :  { %v2574_v45 = vpop.f32.mrf.mxu0 }
 0x539   :  { %v2575_v18 = vadd.f32 %v2574_v45, %v4201_v46 }
 0x53b   :  { %2614 = vst.msk [vmem:[#allocation8 + $0xe0] sm:$0xff] %vm98_vm0, %v2575_v18 }
 0x540   :  { %v2577_v20 = vpop.f32.mrf.mxu0 }
 0x541   :  { %v2578_v6 = vadd.f32 %v2577_v20, %v4201_v46 }
 0x543   :  { %2615 = vst.msk [vmem:[#allocation8 + $0xe8] sm:$0xff] %vm98_vm0, %v2578_v6 }
 0x548   :  { %v2580_v3 = vpop.f32.mrf.mxu0 }
 0x549   :  { %v2581_v63 = vadd.f32 %v2580_v3, %v4201_v46 }
 0x54b   :  { %2616 = vst.msk [vmem:[#allocation8 + $0xf0] sm:$0xff] %vm98_vm0, %v2581_v63 }
 0x550   :  { %v2583_v19 = vpop.f32.mrf.mxu0 }
 0x551   :  { %v2584_v31 = vadd.f32 %v2583_v19, %v4201_v46 }
 0x553   :  { %2617 = vst.msk [vmem:[#allocation8 + $0xf8] sm:$0xff] %vm98_vm0, %v2584_v31 }
 0x554   :  { %2630 = dma.vmem_to_hbm [thread:$0]  %s2623_s27, 4096, %s2625_s30, [#allocation4], %s3112_s20, %s3112_s20, %s3113_s21  }
 0x555   :  { %3109 = dma.done.wait [#allocation4], 4096  }
 0x556   :  { %3110 = vsyncadd [#allocation4], 4294963200 }
 0x557   :  { %2635 = vsyncpa [#allocation3], 1 }
 0x558   :  { %2636 = vsyncpa [#allocation6], 1 }
 0x559   :  { %2637 = vsyncpa [#allocation4], 1 }

</bundles_post_ra>
